<compile_context>
chip_gen: v5e
topology: v5e:2x2
jax: 0.10.0
libtpu: 0.0.40
codegen_flags: <defaults>
</compile_context>

<pallas_src>
import math
import functools

import jax
import jax.numpy as jnp
from jax.experimental import pallas as pl
from jax.experimental.pallas import tpu as pltpu

SQRT2 = math.sqrt(2.0)
_BLUR_1D = (1.0, 3.0, 3.0, 1.0)


# ----------------------------------------------------------------------------
# Pallas kernels — one fused matmul per ConvLayer
# ----------------------------------------------------------------------------
def _conv_kernel(x_ref, w_ref, b_ref, o_ref, *, activate):
    """out = leaky_relu(patches @ w + b, 0.2); sqrt(2) gain pre-folded into w/b."""
    acc = jnp.dot(x_ref[...], w_ref[...], preferred_element_type=jnp.float32)
    acc = acc + b_ref[...]
    if activate:
        acc = jnp.maximum(acc, 0.2 * acc)          # leaky_relu(0.2)
    o_ref[...] = acc.astype(o_ref.dtype)


def _conv_res_kernel(x_ref, w_ref, b_ref, skip_ref, o_ref):
    """Second ResBlock conv with the (out + skip)/sqrt(2) merge fused in."""
    acc = jnp.dot(x_ref[...], w_ref[...], preferred_element_type=jnp.float32)
    acc = acc + b_ref[...]
    acc = jnp.maximum(acc, 0.2 * acc)
    o_ref[...] = ((acc + skip_ref[...]) * (1.0 / SQRT2)).astype(o_ref.dtype)


# ----------------------------------------------------------------------------
# Tiling helpers
# ----------------------------------------------------------------------------
def _choose_tm(m, kc):
    """Row-tile over M: large enough for DMA efficiency, small enough that the
    double-buffered bf16 patch tile stays <= ~4 MiB (safe on v5e/v7x VMEM)."""
    tm = 256
    while tm > 64 and 2 * tm * kc * 2 > (4 << 20):
        tm //= 2
    return m if m < tm else tm          # full-extent block when M is small


def _pad_rows(a, tm):
    rem = (-a.shape[0]) % tm
    if rem:
        a = jnp.pad(a, ((0, rem), (0, 0)))
    return a


# ----------------------------------------------------------------------------
# One ConvLayer: im2col glue + fused Pallas matmul
# ----------------------------------------------------------------------------
def _conv_layer(x, layer, k, stride, pad, *, skip=None, activate=True):
    """x: NHWC.  Returns NHWC output of EqualConv2d(+FusedLeakyReLU)[+residual]."""
    w, b = layer["w"], layer["b"]
    cout = w.shape[1]
    if pad:
        x = jnp.pad(x, ((0, 0), (pad, pad), (pad, pad), (0, 0)))
    n, hp, wp, cin = x.shape
    ho = (hp - k) // stride + 1
    wo = (wp - k) // stride + 1
    m = n * ho * wo
    kc = k * k * cin

    # im2col glue: (M, K*K*Cin) patches, cast to bf16 to halve HBM traffic.
    # TODO(synk): form the K*K taps in-kernel from a haloed VMEM tile (manual
    # DMA) to eliminate the ~9x patch materialization in HBM.
    taps = []
    for ky in range(k):
        for kx in range(k):
            taps.append(jax.lax.slice(
                x, (0, ky, kx, 0),
                (n, ky + stride * (ho - 1) + 1, kx + stride * (wo - 1) + 1, cin),
                (1, stride, stride, 1)))
    patches = jnp.stack(taps, axis=3).reshape(m, kc).astype(jnp.bfloat16)

    tm = _choose_tm(m, kc)
    patches = _pad_rows(patches, tm)
    mp = patches.shape[0]
    grid = (mp // tm,)

    in_specs = [
        pl.BlockSpec((tm, kc), lambda i: (i, 0)),       # patch tile (streamed)
        pl.BlockSpec((kc, cout), lambda i: (0, 0)),     # weights (resident)
        pl.BlockSpec((1, cout), lambda i: (0, 0)),      # bias (resident)
    ]
    args = [patches, w, b]
    if skip is not None:
        args.append(_pad_rows(skip.reshape(m, cout), tm))
        in_specs.append(pl.BlockSpec((tm, cout), lambda i: (i, 0)))
        kernel = _conv_res_kernel
    else:
        kernel = functools.partial(_conv_kernel, activate=activate)

    flops = 2 * mp * kc * cout
    bytes_accessed = (mp * kc * 2 + kc * cout * 2 + mp * cout * 4
                      + (mp * cout * 4 if skip is not None else 0))

    out = pl.pallas_call(
        kernel,
        out_shape=jax.ShapeDtypeStruct((mp, cout), jnp.float32),
        grid=grid,
        in_specs=in_specs,
        out_specs=pl.BlockSpec((tm, cout), lambda i: (i, 0)),
        compiler_params=pltpu.CompilerParams(
            dimension_semantics=("parallel",),          # megacore split on v7x
            vmem_limit_bytes=32 * 1024 * 1024),
        cost_estimate=pl.CostEstimate(
            flops=flops, transcendentals=0, bytes_accessed=bytes_accessed),
    )(*args)
    # NOTE: cout < 128 on the front layers -> lane-masked stores; padding the
    # channel dim to 128 would waste >10x output bandwidth at these widths.
    return out[:m].reshape(n, ho, wo, cout)


# ----------------------------------------------------------------------------
# Parameter prep (equal-lr scale, FLReLU gain, and blur folded into weights)
# ----------------------------------------------------------------------------
def _blur2d():
    k1 = jnp.asarray(_BLUR_1D, jnp.float32)
    k2 = jnp.outer(k1, k1)
    return k2 / jnp.sum(k2)          # normalized 4x4 blur (sum == 64)


def _prep_conv(key, cin, cout, k, *, fold_blur=False, act_gain=SQRT2):
    # EqualConv2d: weight ~ N(0,1) of shape (cout, cin, k, k); equal-lr scale.
    w = jax.random.normal(key, (cout, cin, k, k), jnp.float32)
    w = w * (1.0 / math.sqrt(cin * k * k))
    if fold_blur:
        # Compose Blur(1,3,3,1) pad=(2,2) with the 3x3 stride-2 conv into one
        # effective (k+3)x(k+3) stride-2 kernel (applied to input padded by 2).
        b2d = _blur2d()
        ke = k + 3
        w_eff = jnp.zeros((cout, cin, ke, ke), jnp.float32)
        for p in range(k):
            for q in range(k):
                w_eff = w_eff.at[:, :, p:p + 4, q:q + 4].add(
                    w[:, :, p:p + 1, q:q + 1] * b2d[None, None])
        w, k = w_eff, ke
    w = w * act_gain                 # fold FusedLeakyReLU sqrt(2) gain
    # (ky, kx, ci) ordering matches the im2col patch layout.
    w_mat = jnp.transpose(w, (2, 3, 1, 0)).reshape(k * k * cin, cout)
    bias = jnp.zeros((1, cout), jnp.float32)   # FusedLeakyReLU bias (zero init)
    return {"w": w_mat.astype(jnp.bfloat16), "b": bias}


def init_content_encoder(key, n_downsample, n_res, input_dim, dim):
    """Returns (params: arrays-only pytree, cfg: static python config)."""
    keys = jax.random.split(key, 1 + n_downsample + 2 * n_res)
    ki = 0
    front_p, front_cfg = [], []
    # ConvLayer(input_dim, dim, 3): 3x3 s1 p1 + FusedLeakyReLU
    front_p.append(_prep_conv(keys[ki], input_dim, dim, 3)); ki += 1
    front_cfg.append((3, 1, 1))                          # (k, stride, pad)
    d = dim
    for _ in range(n_downsample):
        # ConvLayer(d, 2d, 3, downsample=True): blur folded -> 6x6 s2 p2
        front_p.append(_prep_conv(keys[ki], d, d * 2, 3, fold_blur=True)); ki += 1
        front_cfg.append((6, 2, 2))
        d *= 2
    res_p = []
    for _ in range(n_res):
        c1 = _prep_conv(keys[ki], d, d, 3); ki += 1
        c2 = _prep_conv(keys[ki], d, d, 3); ki += 1
        res_p.append((c1, c2))
    params = {"front": front_p, "res": res_p}
    cfg = {"front": tuple(front_cfg), "output_dim": d}
    return params, cfg


# ----------------------------------------------------------------------------
# Forward (cfg is static: bound via functools.partial, never traced)
# ----------------------------------------------------------------------------
def content_encoder_forward(params, x_nchw, *, cfg):
    x = jnp.transpose(x_nchw, (0, 2, 3, 1))              # NCHW -> NHWC
    for layer, (k, stride, pad) in zip(params["front"], cfg["front"]):
        x = _conv_layer(x, layer, k, stride, pad)
    # ResBlocks(n_res, d, d, downsample=False): identity skip,
    # residual merge fused into the second conv's epilogue.
    for c1, c2 in params["res"]:
        h = _conv_layer(x, c1, 3, 1, 1)
        x = _conv_layer(h, c2, 3, 1, 1, skip=x)
    return jnp.transpose(x, (0, 3, 1, 2))                # NHWC -> NCHW


if __name__ == "__main__":
    key = jax.random.PRNGKey(0)
    k_x, k_p = jax.random.split(key)

    n_downsample, n_res, input_dim, dim = 1, 2, 4, 8
    x = jax.random.normal(k_x, (2, input_dim, 16, 16), jnp.float32)

    params, cfg = init_content_encoder(k_p, n_downsample, n_res, input_dim, dim)
    fwd = jax.jit(functools.partial(content_encoder_forward, cfg=cfg))
    out = fwd(params, x)
    jax.block_until_ready(out)

    expected = (2, dim * (2 ** n_downsample),
                16 // (2 ** n_downsample), 16 // (2 ** n_downsample))
    assert out.shape == expected, (out.shape, expected)
    assert bool(jnp.all(jnp.isfinite(out)))
    print("KERNEL_OK")
</pallas_src>

<mosaic_0001>
module attributes {stable_mosaic.version = 11 : i64} {
  func.func @_conv_kernel(%arg0: i32, %arg1: memref<256x36xbf16, #tpu.memory_space<vmem>>, %arg2: memref<36x8xbf16, #tpu.memory_space<vmem>>, %arg3: memref<1x8xf32, #tpu.memory_space<vmem>>, %arg4: memref<256x8xf32, #tpu.memory_space<vmem>>) attributes {dimension_semantics = [#tpu.dimension_semantics<parallel>], iteration_bounds = array<i64: 2>, scalar_prefetch = 0 : i64, scratch_operands = 0 : i64, tpu.core_type = #tpu.core_type<tc>, window_params = [{transform_indices = @transform_0, window_bounds = array<i64: 256, 36>}, {pipeline_mode = #tpu.pipeline_mode<synchronous>, transform_indices = @transform_1, window_bounds = array<i64: 36, 8>}, {pipeline_mode = #tpu.pipeline_mode<synchronous>, transform_indices = @transform_2, window_bounds = array<i64: 1, 8>}, {transform_indices = @transform_3, window_bounds = array<i64: 256, 8>}]} {
    %c0 = arith.constant 0 : index
    %c0_0 = arith.constant 0 : index
    %0 = vector.load %arg1[%c0, %c0_0] : memref<256x36xbf16, #tpu.memory_space<vmem>>, vector<256x36xbf16>
    %c0_1 = arith.constant 0 : index
    %c0_2 = arith.constant 0 : index
    %1 = vector.load %arg2[%c0_1, %c0_2] : memref<36x8xbf16, #tpu.memory_space<vmem>>, vector<36x8xbf16>
    %cst = arith.constant dense<0.000000e+00> : vector<256x8xf32>
    %2 = tpu.matmul %0, %1, %cst {dimension_numbers = #tpu.dot_dimension_numbers<[1], [0], [0], [1], [0, 0, 1, 1], [], []>} : vector<256x36xbf16>, vector<36x8xbf16>, vector<256x8xf32> -> vector<256x8xf32>
    %c0_3 = arith.constant 0 : index
    %c0_4 = arith.constant 0 : index
    %3 = vector.load %arg3[%c0_3, %c0_4] : memref<1x8xf32, #tpu.memory_space<vmem>>, vector<1x8xf32>
    %4 = vector.broadcast %3 : vector<1x8xf32> to vector<256x8xf32>
    %5 = arith.addf %2, %4 : vector<256x8xf32>
    %cst_5 = arith.constant 2.000000e-01 : f32
    %6 = vector.broadcast %cst_5 : f32 to vector<256x8xf32>
    %7 = arith.mulf %6, %5 : vector<256x8xf32>
    %8 = arith.maximumf %5, %7 : vector<256x8xf32>
    %c0_6 = arith.constant 0 : index
    %c0_7 = arith.constant 0 : index
    %9 = vector.load %arg4[%c0_6, %c0_7] : memref<256x8xf32, #tpu.memory_space<vmem>>, vector<256x8xf32>
    tpu.vector_store %arg4[%c0_6, %c0_7], %8 {strides = array<i32>} : memref<256x8xf32, #tpu.memory_space<vmem>>, vector<256x8xf32>,
    return
  }
  func.func @transform_0(%arg0: i32) -> (i32, i32) {
    %c0_i32 = arith.constant 0 : i32
    %c0_i32_0 = arith.constant 0 : i32
    return %arg0, %c0_i32 : i32, i32
  }
  func.func @transform_1(%arg0: i32) -> (i32, i32) {
    %c0_i32 = arith.constant 0 : i32
    %c0_i32_0 = arith.constant 0 : i32
    %c0_i32_1 = arith.constant 0 : i32
    return %c0_i32, %c0_i32_0 : i32, i32
  }
  func.func @transform_2(%arg0: i32) -> (i32, i32) {
    %c0_i32 = arith.constant 0 : i32
    %c0_i32_0 = arith.constant 0 : i32
    %c0_i32_1 = arith.constant 0 : i32
    return %c0_i32, %c0_i32_0 : i32, i32
  }
  func.func @transform_3(%arg0: i32) -> (i32, i32) {
    %c0_i32 = arith.constant 0 : i32
    %c0_i32_0 = arith.constant 0 : i32
    return %arg0, %c0_i32 : i32, i32
  }
}

module attributes {stable_mosaic.version = 11 : i64} {
  func.func @_conv_kernel(%arg0: i32, %arg1: memref<128x288xbf16, #tpu.memory_space<vmem>>, %arg2: memref<288x16xbf16, #tpu.memory_space<vmem>>, %arg3: memref<1x16xf32, #tpu.memory_space<vmem>>, %arg4: memref<128x16xf32, #tpu.memory_space<vmem>>) attributes {dimension_semantics = [#tpu.dimension_semantics<parallel>], iteration_bounds = array<i64: 1>, scalar_prefetch = 0 : i64, scratch_operands = 0 : i64, tpu.core_type = #tpu.core_type<tc>, window_params = [{transform_indices = @transform_0, window_bounds = array<i64: 128, 288>}, {pipeline_mode = #tpu.pipeline_mode<synchronous>, transform_indices = @transform_1, window_bounds = array<i64: 288, 16>}, {pipeline_mode = #tpu.pipeline_mode<synchronous>, transform_indices = @transform_2, window_bounds = array<i64: 1, 16>}, {transform_indices = @transform_3, window_bounds = array<i64: 128, 16>}]} {
    %c0 = arith.constant 0 : index
    %c0_0 = arith.constant 0 : index
    %0 = vector.load %arg1[%c0, %c0_0] : memref<128x288xbf16, #tpu.memory_space<vmem>>, vector<128x288xbf16>
    %c0_1 = arith.constant 0 : index
    %c0_2 = arith.constant 0 : index
    %1 = vector.load %arg2[%c0_1, %c0_2] : memref<288x16xbf16, #tpu.memory_space<vmem>>, vector<288x16xbf16>
    %cst = arith.constant dense<0.000000e+00> : vector<128x16xf32>
    %2 = tpu.matmul %0, %1, %cst {dimension_numbers = #tpu.dot_dimension_numbers<[1], [0], [0], [1], [0, 0, 1, 1], [], []>} : vector<128x288xbf16>, vector<288x16xbf16>, vector<128x16xf32> -> vector<128x16xf32>
    %c0_3 = arith.constant 0 : index
    %c0_4 = arith.constant 0 : index
    %3 = vector.load %arg3[%c0_3, %c0_4] : memref<1x16xf32, #tpu.memory_space<vmem>>, vector<1x16xf32>
    %4 = vector.broadcast %3 : vector<1x16xf32> to vector<128x16xf32>
    %5 = arith.addf %2, %4 : vector<128x16xf32>
    %cst_5 = arith.constant 2.000000e-01 : f32
    %6 = vector.broadcast %cst_5 : f32 to vector<128x16xf32>
    %7 = arith.mulf %6, %5 : vector<128x16xf32>
    %8 = arith.maximumf %5, %7 : vector<128x16xf32>
    %c0_6 = arith.constant 0 : index
    %c0_7 = arith.constant 0 : index
    %9 = vector.load %arg4[%c0_6, %c0_7] : memref<128x16xf32, #tpu.memory_space<vmem>>, vector<128x16xf32>
    tpu.vector_store %arg4[%c0_6, %c0_7], %8 {strides = array<i32>} : memref<128x16xf32, #tpu.memory_space<vmem>>, vector<128x16xf32>,
    return
  }
  func.func @transform_0(%arg0: i32) -> (i32, i32) {
    %c0_i32 = arith.constant 0 : i32
    %c0_i32_0 = arith.constant 0 : i32
    return %arg0, %c0_i32 : i32, i32
  }
  func.func @transform_1(%arg0: i32) -> (i32, i32) {
    %c0_i32 = arith.constant 0 : i32
    %c0_i32_0 = arith.constant 0 : i32
    %c0_i32_1 = arith.constant 0 : i32
    return %c0_i32, %c0_i32_0 : i32, i32
  }
  func.func @transform_2(%arg0: i32) -> (i32, i32) {
    %c0_i32 = arith.constant 0 : i32
    %c0_i32_0 = arith.constant 0 : i32
    %c0_i32_1 = arith.constant 0 : i32
    return %c0_i32, %c0_i32_0 : i32, i32
  }
  func.func @transform_3(%arg0: i32) -> (i32, i32) {
    %c0_i32 = arith.constant 0 : i32
    %c0_i32_0 = arith.constant 0 : i32
    return %arg0, %c0_i32 : i32, i32
  }
}

module attributes {stable_mosaic.version = 11 : i64} {
  func.func @_conv_kernel(%arg0: i32, %arg1: memref<128x144xbf16, #tpu.memory_space<vmem>>, %arg2: memref<144x16xbf16, #tpu.memory_space<vmem>>, %arg3: memref<1x16xf32, #tpu.memory_space<vmem>>, %arg4: memref<128x16xf32, #tpu.memory_space<vmem>>) attributes {dimension_semantics = [#tpu.dimension_semantics<parallel>], iteration_bounds = array<i64: 1>, scalar_prefetch = 0 : i64, scratch_operands = 0 : i64, tpu.core_type = #tpu.core_type<tc>, window_params = [{transform_indices = @transform_0, window_bounds = array<i64: 128, 144>}, {pipeline_mode = #tpu.pipeline_mode<synchronous>, transform_indices = @transform_1, window_bounds = array<i64: 144, 16>}, {pipeline_mode = #tpu.pipeline_mode<synchronous>, transform_indices = @transform_2, window_bounds = array<i64: 1, 16>}, {transform_indices = @transform_3, window_bounds = array<i64: 128, 16>}]} {
    %c0 = arith.constant 0 : index
    %c0_0 = arith.constant 0 : index
    %0 = vector.load %arg1[%c0, %c0_0] : memref<128x144xbf16, #tpu.memory_space<vmem>>, vector<128x144xbf16>
    %c0_1 = arith.constant 0 : index
    %c0_2 = arith.constant 0 : index
    %1 = vector.load %arg2[%c0_1, %c0_2] : memref<144x16xbf16, #tpu.memory_space<vmem>>, vector<144x16xbf16>
    %cst = arith.constant dense<0.000000e+00> : vector<128x16xf32>
    %2 = tpu.matmul %0, %1, %cst {dimension_numbers = #tpu.dot_dimension_numbers<[1], [0], [0], [1], [0, 0, 1, 1], [], []>} : vector<128x144xbf16>, vector<144x16xbf16>, vector<128x16xf32> -> vector<128x16xf32>
    %c0_3 = arith.constant 0 : index
    %c0_4 = arith.constant 0 : index
    %3 = vector.load %arg3[%c0_3, %c0_4] : memref<1x16xf32, #tpu.memory_space<vmem>>, vector<1x16xf32>
    %4 = vector.broadcast %3 : vector<1x16xf32> to vector<128x16xf32>
    %5 = arith.addf %2, %4 : vector<128x16xf32>
    %cst_5 = arith.constant 2.000000e-01 : f32
    %6 = vector.broadcast %cst_5 : f32 to vector<128x16xf32>
    %7 = arith.mulf %6, %5 : vector<128x16xf32>
    %8 = arith.maximumf %5, %7 : vector<128x16xf32>
    %c0_6 = arith.constant 0 : index
    %c0_7 = arith.constant 0 : index
    %9 = vector.load %arg4[%c0_6, %c0_7] : memref<128x16xf32, #tpu.memory_space<vmem>>, vector<128x16xf32>
    tpu.vector_store %arg4[%c0_6, %c0_7], %8 {strides = array<i32>} : memref<128x16xf32, #tpu.memory_space<vmem>>, vector<128x16xf32>,
    return
  }
  func.func @transform_0(%arg0: i32) -> (i32, i32) {
    %c0_i32 = arith.constant 0 : i32
    %c0_i32_0 = arith.constant 0 : i32
    return %arg0, %c0_i32 : i32, i32
  }
  func.func @transform_1(%arg0: i32) -> (i32, i32) {
    %c0_i32 = arith.constant 0 : i32
    %c0_i32_0 = arith.constant 0 : i32
    %c0_i32_1 = arith.constant 0 : i32
    return %c0_i32, %c0_i32_0 : i32, i32
  }
  func.func @transform_2(%arg0: i32) -> (i32, i32) {
    %c0_i32 = arith.constant 0 : i32
    %c0_i32_0 = arith.constant 0 : i32
    %c0_i32_1 = arith.constant 0 : i32
    return %c0_i32, %c0_i32_0 : i32, i32
  }
  func.func @transform_3(%arg0: i32) -> (i32, i32) {
    %c0_i32 = arith.constant 0 : i32
    %c0_i32_0 = arith.constant 0 : i32
    return %arg0, %c0_i32 : i32, i32
  }
}

module attributes {stable_mosaic.version = 11 : i64} {
  func.func @_conv_res_kernel(%arg0: i32, %arg1: memref<128x144xbf16, #tpu.memory_space<vmem>>, %arg2: memref<144x16xbf16, #tpu.memory_space<vmem>>, %arg3: memref<1x16xf32, #tpu.memory_space<vmem>>, %arg4: memref<128x16xf32, #tpu.memory_space<vmem>>, %arg5: memref<128x16xf32, #tpu.memory_space<vmem>>) attributes {dimension_semantics = [#tpu.dimension_semantics<parallel>], iteration_bounds = array<i64: 1>, scalar_prefetch = 0 : i64, scratch_operands = 0 : i64, tpu.core_type = #tpu.core_type<tc>, window_params = [{transform_indices = @transform_0, window_bounds = array<i64: 128, 144>}, {pipeline_mode = #tpu.pipeline_mode<synchronous>, transform_indices = @transform_1, window_bounds = array<i64: 144, 16>}, {pipeline_mode = #tpu.pipeline_mode<synchronous>, transform_indices = @transform_2, window_bounds = array<i64: 1, 16>}, {transform_indices = @transform_3, window_bounds = array<i64: 128, 16>}, {transform_indices = @transform_4, window_bounds = array<i64: 128, 16>}]} {
    %c0 = arith.constant 0 : index
    %c0_0 = arith.constant 0 : index
    %0 = vector.load %arg1[%c0, %c0_0] : memref<128x144xbf16, #tpu.memory_space<vmem>>, vector<128x144xbf16>
    %c0_1 = arith.constant 0 : index
    %c0_2 = arith.constant 0 : index
    %1 = vector.load %arg2[%c0_1, %c0_2] : memref<144x16xbf16, #tpu.memory_space<vmem>>, vector<144x16xbf16>
    %cst = arith.constant dense<0.000000e+00> : vector<128x16xf32>
    %2 = tpu.matmul %0, %1, %cst {dimension_numbers = #tpu.dot_dimension_numbers<[1], [0], [0], [1], [0, 0, 1, 1], [], []>} : vector<128x144xbf16>, vector<144x16xbf16>, vector<128x16xf32> -> vector<128x16xf32>
    %c0_3 = arith.constant 0 : index
    %c0_4 = arith.constant 0 : index
    %3 = vector.load %arg3[%c0_3, %c0_4] : memref<1x16xf32, #tpu.memory_space<vmem>>, vector<1x16xf32>
    %4 = vector.broadcast %3 : vector<1x16xf32> to vector<128x16xf32>
    %5 = arith.addf %2, %4 : vector<128x16xf32>
    %cst_5 = arith.constant 2.000000e-01 : f32
    %6 = vector.broadcast %cst_5 : f32 to vector<128x16xf32>
    %7 = arith.mulf %6, %5 : vector<128x16xf32>
    %8 = arith.maximumf %5, %7 : vector<128x16xf32>
    %c0_6 = arith.constant 0 : index
    %c0_7 = arith.constant 0 : index
    %9 = vector.load %arg4[%c0_6, %c0_7] : memref<128x16xf32, #tpu.memory_space<vmem>>, vector<128x16xf32>
    %10 = arith.addf %8, %9 : vector<128x16xf32>
    %cst_8 = arith.constant 0.707106769 : f32
    %11 = vector.broadcast %cst_8 : f32 to vector<128x16xf32>
    %12 = arith.mulf %10, %11 : vector<128x16xf32>
    %c0_9 = arith.constant 0 : index
    %c0_10 = arith.constant 0 : index
    %13 = vector.load %arg5[%c0_9, %c0_10] : memref<128x16xf32, #tpu.memory_space<vmem>>, vector<128x16xf32>
    tpu.vector_store %arg5[%c0_9, %c0_10], %12 {strides = array<i32>} : memref<128x16xf32, #tpu.memory_space<vmem>>, vector<128x16xf32>,
    return
  }
  func.func @transform_0(%arg0: i32) -> (i32, i32) {
    %c0_i32 = arith.constant 0 : i32
    %c0_i32_0 = arith.constant 0 : i32
    return %arg0, %c0_i32 : i32, i32
  }
  func.func @transform_1(%arg0: i32) -> (i32, i32) {
    %c0_i32 = arith.constant 0 : i32
    %c0_i32_0 = arith.constant 0 : i32
    %c0_i32_1 = arith.constant 0 : i32
    return %c0_i32, %c0_i32_0 : i32, i32
  }
  func.func @transform_2(%arg0: i32) -> (i32, i32) {
    %c0_i32 = arith.constant 0 : i32
    %c0_i32_0 = arith.constant 0 : i32
    %c0_i32_1 = arith.constant 0 : i32
    return %c0_i32, %c0_i32_0 : i32, i32
  }
  func.func @transform_3(%arg0: i32) -> (i32, i32) {
    %c0_i32 = arith.constant 0 : i32
    %c0_i32_0 = arith.constant 0 : i32
    return %arg0, %c0_i32 : i32, i32
  }
  func.func @transform_4(%arg0: i32) -> (i32, i32) {
    %c0_i32 = arith.constant 0 : i32
    %c0_i32_0 = arith.constant 0 : i32
    return %arg0, %c0_i32 : i32, i32
  }
}

module attributes {stable_mosaic.version = 11 : i64} {
  func.func @_conv_res_kernel(%arg0: i32, %arg1: memref<128x144xbf16, #tpu.memory_space<vmem>>, %arg2: memref<144x16xbf16, #tpu.memory_space<vmem>>, %arg3: memref<1x16xf32, #tpu.memory_space<vmem>>, %arg4: memref<128x16xf32, #tpu.memory_space<vmem>>, %arg5: memref<128x16xf32, #tpu.memory_space<vmem>>) attributes {dimension_semantics = [#tpu.dimension_semantics<parallel>], iteration_bounds = array<i64: 1>, scalar_prefetch = 0 : i64, scratch_operands = 0 : i64, tpu.core_type = #tpu.core_type<tc>, window_params = [{transform_indices = @transform_0, window_bounds = array<i64: 128, 144>}, {pipeline_mode = #tpu.pipeline_mode<synchronous>, transform_indices = @transform_1, window_bounds = array<i64: 144, 16>}, {pipeline_mode = #tpu.pipeline_mode<synchronous>, transform_indices = @transform_2, window_bounds = array<i64: 1, 16>}, {transform_indices = @transform_3, window_bounds = array<i64: 128, 16>}, {transform_indices = @transform_4, window_bounds = array<i64: 128, 16>}]} {
    %c0 = arith.constant 0 : index
    %c0_0 = arith.constant 0 : index
    %0 = vector.load %arg1[%c0, %c0_0] : memref<128x144xbf16, #tpu.memory_space<vmem>>, vector<128x144xbf16>
    %c0_1 = arith.constant 0 : index
    %c0_2 = arith.constant 0 : index
    %1 = vector.load %arg2[%c0_1, %c0_2] : memref<144x16xbf16, #tpu.memory_space<vmem>>, vector<144x16xbf16>
    %cst = arith.constant dense<0.000000e+00> : vector<128x16xf32>
    %2 = tpu.matmul %0, %1, %cst {dimension_numbers = #tpu.dot_dimension_numbers<[1], [0], [0], [1], [0, 0, 1, 1], [], []>} : vector<128x144xbf16>, vector<144x16xbf16>, vector<128x16xf32> -> vector<128x16xf32>
    %c0_3 = arith.constant 0 : index
    %c0_4 = arith.constant 0 : index
    %3 = vector.load %arg3[%c0_3, %c0_4] : memref<1x16xf32, #tpu.memory_space<vmem>>, vector<1x16xf32>
    %4 = vector.broadcast %3 : vector<1x16xf32> to vector<128x16xf32>
    %5 = arith.addf %2, %4 : vector<128x16xf32>
    %cst_5 = arith.constant 2.000000e-01 : f32
    %6 = vector.broadcast %cst_5 : f32 to vector<128x16xf32>
    %7 = arith.mulf %6, %5 : vector<128x16xf32>
    %8 = arith.maximumf %5, %7 : vector<128x16xf32>
    %c0_6 = arith.constant 0 : index
    %c0_7 = arith.constant 0 : index
    %9 = vector.load %arg4[%c0_6, %c0_7] : memref<128x16xf32, #tpu.memory_space<vmem>>, vector<128x16xf32>
    %10 = arith.addf %8, %9 : vector<128x16xf32>
    %cst_8 = arith.constant 0.707106769 : f32
    %11 = vector.broadcast %cst_8 : f32 to vector<128x16xf32>
    %12 = arith.mulf %10, %11 : vector<128x16xf32>
    %c0_9 = arith.constant 0 : index
    %c0_10 = arith.constant 0 : index
    %13 = vector.load %arg5[%c0_9, %c0_10] : memref<128x16xf32, #tpu.memory_space<vmem>>, vector<128x16xf32>
    tpu.vector_store %arg5[%c0_9, %c0_10], %12 {strides = array<i32>} : memref<128x16xf32, #tpu.memory_space<vmem>>, vector<128x16xf32>,
    return
  }
  func.func @transform_0(%arg0: i32) -> (i32, i32) {
    %c0_i32 = arith.constant 0 : i32
    %c0_i32_0 = arith.constant 0 : i32
    return %arg0, %c0_i32 : i32, i32
  }
  func.func @transform_1(%arg0: i32) -> (i32, i32) {
    %c0_i32 = arith.constant 0 : i32
    %c0_i32_0 = arith.constant 0 : i32
    %c0_i32_1 = arith.constant 0 : i32
    return %c0_i32, %c0_i32_0 : i32, i32
  }
  func.func @transform_2(%arg0: i32) -> (i32, i32) {
    %c0_i32 = arith.constant 0 : i32
    %c0_i32_0 = arith.constant 0 : i32
    %c0_i32_1 = arith.constant 0 : i32
    return %c0_i32, %c0_i32_0 : i32, i32
  }
  func.func @transform_3(%arg0: i32) -> (i32, i32) {
    %c0_i32 = arith.constant 0 : i32
    %c0_i32_0 = arith.constant 0 : i32
    return %arg0, %c0_i32 : i32, i32
  }
  func.func @transform_4(%arg0: i32) -> (i32, i32) {
    %c0_i32 = arith.constant 0 : i32
    %c0_i32_0 = arith.constant 0 : i32
    return %arg0, %c0_i32 : i32, i32
  }
}

</mosaic_0001>

<bundles_post_ra>
// kernel: content_encoder_forward.6
= control target key start
LH: loop header
LB: loop body
LE: loop exit
PB: predicated region body
PF: predicated region fallthrough
CT: control target
= control target key end

     0   :  { %s769_s12 = smov 0   ;;  %s936_s0 = inlined_call_operand.vmem [shape: bf16[512,36], index: 0, kind: input, shape index: {}]   ;;  %s937_s1 = inlined_call_operand.vmem [shape: bf16[36,8], index: 1, kind: input, shape index: {}]   ;;  %s938_s2 = inlined_call_operand.vmem [shape: f32[1,8], index: 2, kind: input, shape index: {}]   ;;  %s939_s3 = inlined_call_operand.vmem [shape: f32[512,8], index: 3, kind: output, shape index: {}]  }
   0x1 LB: > { %s606_s13 = sadd.s32 4294967295, %s747_s12   ;;  %p610_p0 = scmp.ge.s32.totalorder %s747_s12, 1  ;;  %s747_s12 = sphi %s769_s12, %s13_s12  }
   0x2   : > { %p138_p1 = scmp.lt.s32.totalorder %s747_s12, 3 }
   0x4   : > { %p139_p2 = pnand %p610_p0, %p138_p1 }
   0x5   : > { %s611_s16 = sshll.u32 (!%p139_p2), %s606_s13, 5 }
   0x6   : > { %142 = sbr.rel (%p139_p2) target bundleno = 225 (0xe1), region = 32  ;;  %p163_p3 = scmp.lt.s32.totalorder (!%p139_p2), %s611_s16, 63 }
   0xb   : > { %v211_v0 = vld [vmem:[%s937_s1 + $0x10] sm:$0x3]  ;;  %vm360_vm0 = vcmask 1041408   ;;  %s941_s16 = smov (!%p163_p3, %s611_s16), 63  ;;  %v722_v4 = vld [vmem:[%s937_s1 + $0x8] sm:$0xff]  ;;  %v721_v5 = vld [vmem:[%s937_s1] sm:$0xff] }
   0xc   : > { %v305_v1 = vunpack.c.l.b16 %v211_v0  ;;  %s612_s19 = sshll.u32 %s941_s16, 2  ;;  %vm311_vm1 = vcmask 293888   ;;  %v829_v22 = vld [vmem:[%s938_s2] ss:$0 sm:$0xff]  ;;  %s614_s27 = sshll.u32 %s941_s16, 3  ;;  %vm517_vm2 = vcmask 64512  }
   0xd   : > { %s792_s24 = scalar_lea.vmem %s936_s0, %s612_s19  ;;  %s837_s30 = scalar_lea.vmem %s939_s3, %s614_s27 }
   0xe   : > { %v308_v2 = vpack.c.b16 %v305_v1, %v305_v1  ;;  %v705_v6 = vld [vmem:[%s792_s24] sm:$0xff]  ;;  %v706_v10 = vld [vmem:[%s792_s24 + $0x8] sm:$0xff]  ;;  %v707_v14 = vld [vmem:[%s792_s24 + $0x10] sm:$0xff] }
   0xf   : > { %v709_v7 = vld [vmem:[%s792_s24 + $0x20] sm:$0xff]  ;;  %v710_v11 = vld [vmem:[%s792_s24 + $0x28] sm:$0xff]  ;;  %v711_v15 = vld [vmem:[%s792_s24 + $0x30] sm:$0xff] }
  0x10   : > { %v362_v3 = vsel %vm360_vm0, %v308_v2, 0  ;;  %v713_v8 = vld [vmem:[%s792_s24 + $0x40] sm:$0xff]  ;;  %v714_v12 = vld [vmem:[%s792_s24 + $0x48] sm:$0xff]  ;;  %v715_v16 = vld [vmem:[%s792_s24 + $0x50] sm:$0xff] }
  0x11   : > { %369 = vmatpush.bf16.msra.mxu0 %v362_v3  ;;  %723 = vmatpush.bf16.msra.mxu1 %v362_v3  ;;  %v717_v9 = vld [vmem:[%s792_s24 + $0x60] sm:$0xff]  ;;  %v718_v13 = vld [vmem:[%s792_s24 + $0x68] sm:$0xff]  ;;  %v719_v17 = vld [vmem:[%s792_s24 + $0x70] sm:$0xff] }
  0x12   : > { %724 = vmatpush.bf16.msra.mxu2 %v362_v3  ;;  %725 = vmatpush.bf16.msra.mxu3 %v362_v3  ;;  %v708_v18 = vld [vmem:[%s792_s24 + $0x18] sm:$0xff] }
  0x13   : > { %v712_v19 = vld [vmem:[%s792_s24 + $0x38] sm:$0xff] }
  0x14   : > { %v716_v20 = vld [vmem:[%s792_s24 + $0x58] sm:$0xff] }
  0x15   : > { %370 = vmatpush.bf16.msra.mxu0 %v722_v4  ;;  %726 = vmatpush.bf16.msra.mxu1 %v722_v4  ;;  %v720_v21 = vld [vmem:[%s792_s24 + $0x78] sm:$0xff] }
  0x16   : > { %727 = vmatpush.bf16.msra.mxu2 %v722_v4  ;;  %728 = vmatpush.bf16.msra.mxu3 %v722_v4 }
  0x19   : > { %371 = vmatpush.bf16.msra.mxu0 %v721_v5  ;;  %729 = vmatpush.bf16.msra.mxu1 %v721_v5 }
  0x1a   : > { %730 = vmatpush.bf16.msra.mxu2 %v721_v5  ;;  %731 = vmatpush.bf16.msra.mxu3 %v721_v5 }
  0x1c   : > { %687 = vmatmul.msk.bf16.vlgmr.msra.gmra.mxu0 %vm311_vm1, %v705_v6  ;;  %691 = vmatmul.msk.bf16.vlgmr.msra.gmra.mxu1 %vm311_vm1, %v709_v7 }
  0x1d   : > { %695 = vmatmul.msk.bf16.vlgmr.msra.gmra.mxu2 %vm311_vm1, %v713_v8  ;;  %699 = vmatmul.msk.bf16.vlgmr.msra.gmra.mxu3 %vm311_vm1, %v717_v9 }
  0x2c   : > { %688 = vmatmul.msk.bf16.gmra.mxu0 %vm311_vm1, %v706_v10  ;;  %692 = vmatmul.msk.bf16.gmra.mxu1 %vm311_vm1, %v710_v11 }
  0x2d   : > { %696 = vmatmul.msk.bf16.gmra.mxu2 %vm311_vm1, %v714_v12  ;;  %700 = vmatmul.msk.bf16.gmra.mxu3 %vm311_vm1, %v718_v13 }
  0x3c   : > { %689 = vmatmul.msk.bf16.gmra.mxu0 %vm311_vm1, %v707_v14  ;;  %693 = vmatmul.msk.bf16.gmra.mxu1 %vm311_vm1, %v711_v15 }
  0x3d   : > { %697 = vmatmul.msk.bf16.gmra.mxu2 %vm311_vm1, %v715_v16  ;;  %701 = vmatmul.msk.bf16.gmra.mxu3 %vm311_vm1, %v719_v17 }
  0x4c   : > { %690 = vmatmul.msk.bf16.gmra.mxu0 %vm311_vm1, %v708_v18  ;;  %694 = vmatmul.msk.bf16.gmra.mxu1 %vm311_vm1, %v712_v19 }
  0x4d   : > { %698 = vmatmul.msk.bf16.gmra.mxu2 %vm311_vm1, %v716_v20  ;;  %702 = vmatmul.msk.bf16.gmra.mxu3 %vm311_vm1, %v720_v21 }
  0x99   : > { %v373_v23 = vpop.f32.mrf.mxu0  ;;  %v393_v24 = vpop.f32.mrf.mxu1 }
  0x9a   : > { %v374_v25 = vadd.f32 %v829_v22, %v373_v23  ;;  %v394_v26 = vadd.f32 %v829_v22, %v393_v24 }
  0x9c   : > { %v453_v27 = vmul.f32 0.2, %v374_v25  ;;  %v461_v28 = vmul.f32 0.2, %v394_v26 }
  0x9e   : > { %v485_v29 = vmax.f32 %v374_v25, %v453_v27  ;;  %v493_v30 = vmax.f32 %v394_v26, %v461_v28 }
  0xa0   : > { %518 = vst.msk [vmem:[%s837_s30] sm:$0xff] %vm517_vm2, %v485_v29  ;;  %v413_v31 = vpop.f32.mrf.mxu2  ;;  %v433_v32 = vpop.f32.mrf.mxu3 }
  0xa1   : > { %526 = vst.msk [vmem:[%s837_s30 + $0x40] sm:$0xff] %vm517_vm2, %v493_v30  ;;  %v414_v33 = vadd.f32 %v829_v22, %v413_v31  ;;  %v434_v34 = vadd.f32 %v829_v22, %v433_v32  ;;  %v375_v35 = vpop.f32.mrf.mxu0  ;;  %v395_v36 = vpop.f32.mrf.mxu1 }
  0xa2   : > { %v376_v37 = vadd.f32 %v829_v22, %v375_v35  ;;  %v396_v38 = vadd.f32 %v829_v22, %v395_v36 }
  0xa3   : > { %v469_v39 = vmul.f32 0.2, %v414_v33  ;;  %v477_v40 = vmul.f32 0.2, %v434_v34 }
  0xa4   : > { %v454_v41 = vmul.f32 0.2, %v376_v37  ;;  %v462_v42 = vmul.f32 0.2, %v396_v38 }
  0xa5   : > { %v501_v43 = vmax.f32 %v414_v33, %v469_v39  ;;  %v509_v44 = vmax.f32 %v434_v34, %v477_v40 }
  0xa6   : > { %v486_v45 = vmax.f32 %v376_v37, %v454_v41  ;;  %v494_v46 = vmax.f32 %v396_v38, %v462_v42 }
  0xa7   : > { %534 = vst.msk [vmem:[%s837_s30 + $0x80] sm:$0xff] %vm517_vm2, %v501_v43 }
  0xa8   : > { %542 = vst.msk [vmem:[%s837_s30 + $0xc0] sm:$0xff] %vm517_vm2, %v509_v44  ;;  %v415_v47 = vpop.f32.mrf.mxu2  ;;  %v435_v48 = vpop.f32.mrf.mxu3 }
  0xa9   : > { %519 = vst.msk [vmem:[%s837_s30 + $0x8] sm:$0xff] %vm517_vm2, %v486_v45  ;;  %v416_v49 = vadd.f32 %v829_v22, %v415_v47  ;;  %v436_v50 = vadd.f32 %v829_v22, %v435_v48  ;;  %v378_v51 = vpop.f32.mrf.mxu0  ;;  %v398_v52 = vpop.f32.mrf.mxu1 }
  0xaa   : > { %527 = vst.msk [vmem:[%s837_s30 + $0x48] sm:$0xff] %vm517_vm2, %v494_v46  ;;  %v379_v53 = vadd.f32 %v829_v22, %v378_v51  ;;  %v399_v54 = vadd.f32 %v829_v22, %v398_v52 }
  0xab   : > { %v470_v55 = vmul.f32 0.2, %v416_v49  ;;  %v478_v56 = vmul.f32 0.2, %v436_v50 }
  0xac   : > { %v455_v57 = vmul.f32 0.2, %v379_v53  ;;  %v463_v58 = vmul.f32 0.2, %v399_v54 }
  0xad   : > { %v502_v59 = vmax.f32 %v416_v49, %v470_v55  ;;  %v510_v60 = vmax.f32 %v436_v50, %v478_v56 }
  0xae   : > { %v487_v61 = vmax.f32 %v379_v53, %v455_v57  ;;  %v495_v62 = vmax.f32 %v399_v54, %v463_v58 }
  0xaf   : > { %535 = vst.msk [vmem:[%s837_s30 + $0x88] sm:$0xff] %vm517_vm2, %v502_v59 }
  0xb0   : > { %543 = vst.msk [vmem:[%s837_s30 + $0xc8] sm:$0xff] %vm517_vm2, %v510_v60  ;;  %v418_v63 = vpop.f32.mrf.mxu2  ;;  %v438_v0 = vpop.f32.mrf.mxu3 }
  0xb1   : > { %520 = vst.msk [vmem:[%s837_s30 + $0x10] sm:$0xff] %vm517_vm2, %v487_v61  ;;  %v419_v1 = vadd.f32 %v829_v22, %v418_v63  ;;  %v439_v2 = vadd.f32 %v829_v22, %v438_v0  ;;  %v380_v3 = vpop.f32.mrf.mxu0  ;;  %v400_v4 = vpop.f32.mrf.mxu1 }
  0xb2   : > { %528 = vst.msk [vmem:[%s837_s30 + $0x50] sm:$0xff] %vm517_vm2, %v495_v62  ;;  %v381_v5 = vadd.f32 %v829_v22, %v380_v3  ;;  %v401_v6 = vadd.f32 %v829_v22, %v400_v4 }
  0xb3   : > { %v471_v7 = vmul.f32 0.2, %v419_v1  ;;  %v479_v8 = vmul.f32 0.2, %v439_v2 }
  0xb4   : > { %v456_v9 = vmul.f32 0.2, %v381_v5  ;;  %v464_v10 = vmul.f32 0.2, %v401_v6 }
  0xb5   : > { %v503_v11 = vmax.f32 %v419_v1, %v471_v7  ;;  %v511_v12 = vmax.f32 %v439_v2, %v479_v8 }
  0xb6   : > { %v488_v13 = vmax.f32 %v381_v5, %v456_v9  ;;  %v496_v14 = vmax.f32 %v401_v6, %v464_v10 }
  0xb7   : > { %536 = vst.msk [vmem:[%s837_s30 + $0x90] sm:$0xff] %vm517_vm2, %v503_v11 }
  0xb8   : > { %544 = vst.msk [vmem:[%s837_s30 + $0xd0] sm:$0xff] %vm517_vm2, %v511_v12  ;;  %v420_v15 = vpop.f32.mrf.mxu2  ;;  %v440_v16 = vpop.f32.mrf.mxu3 }
  0xb9   : > { %521 = vst.msk [vmem:[%s837_s30 + $0x18] sm:$0xff] %vm517_vm2, %v488_v13  ;;  %v421_v17 = vadd.f32 %v829_v22, %v420_v15  ;;  %v441_v18 = vadd.f32 %v829_v22, %v440_v16  ;;  %v383_v19 = vpop.f32.mrf.mxu0  ;;  %v403_v20 = vpop.f32.mrf.mxu1 }
  0xba   : > { %529 = vst.msk [vmem:[%s837_s30 + $0x58] sm:$0xff] %vm517_vm2, %v496_v14  ;;  %v384_v21 = vadd.f32 %v829_v22, %v383_v19  ;;  %v404_v23 = vadd.f32 %v829_v22, %v403_v20 }
  0xbb   : > { %v472_v24 = vmul.f32 0.2, %v421_v17  ;;  %v480_v25 = vmul.f32 0.2, %v441_v18 }
  0xbc   : > { %v457_v26 = vmul.f32 0.2, %v384_v21  ;;  %v465_v27 = vmul.f32 0.2, %v404_v23 }
  0xbd   : > { %v504_v28 = vmax.f32 %v421_v17, %v472_v24  ;;  %v512_v29 = vmax.f32 %v441_v18, %v480_v25 }
  0xbe   : > { %v489_v30 = vmax.f32 %v384_v21, %v457_v26  ;;  %v497_v31 = vmax.f32 %v404_v23, %v465_v27 }
  0xbf   : > { %537 = vst.msk [vmem:[%s837_s30 + $0x98] sm:$0xff] %vm517_vm2, %v504_v28 }
  0xc0   : > { %545 = vst.msk [vmem:[%s837_s30 + $0xd8] sm:$0xff] %vm517_vm2, %v512_v29  ;;  %v423_v32 = vpop.f32.mrf.mxu2  ;;  %v443_v33 = vpop.f32.mrf.mxu3 }
  0xc1   : > { %522 = vst.msk [vmem:[%s837_s30 + $0x20] sm:$0xff] %vm517_vm2, %v489_v30  ;;  %v424_v34 = vadd.f32 %v829_v22, %v423_v32  ;;  %v444_v35 = vadd.f32 %v829_v22, %v443_v33  ;;  %v385_v36 = vpop.f32.mrf.mxu0  ;;  %v405_v37 = vpop.f32.mrf.mxu1 }
  0xc2   : > { %530 = vst.msk [vmem:[%s837_s30 + $0x60] sm:$0xff] %vm517_vm2, %v497_v31  ;;  %v386_v38 = vadd.f32 %v829_v22, %v385_v36  ;;  %v406_v39 = vadd.f32 %v829_v22, %v405_v37 }
  0xc3   : > { %v473_v40 = vmul.f32 0.2, %v424_v34  ;;  %v481_v41 = vmul.f32 0.2, %v444_v35 }
  0xc4   : > { %v458_v42 = vmul.f32 0.2, %v386_v38  ;;  %v466_v43 = vmul.f32 0.2, %v406_v39 }
  0xc5   : > { %v505_v44 = vmax.f32 %v424_v34, %v473_v40  ;;  %v513_v45 = vmax.f32 %v444_v35, %v481_v41 }
  0xc6   : > { %v490_v46 = vmax.f32 %v386_v38, %v458_v42  ;;  %v498_v47 = vmax.f32 %v406_v39, %v466_v43 }
  0xc7   : > { %538 = vst.msk [vmem:[%s837_s30 + $0xa0] sm:$0xff] %vm517_vm2, %v505_v44 }
  0xc8   : > { %546 = vst.msk [vmem:[%s837_s30 + $0xe0] sm:$0xff] %vm517_vm2, %v513_v45  ;;  %v425_v48 = vpop.f32.mrf.mxu2  ;;  %v445_v49 = vpop.f32.mrf.mxu3 }
  0xc9   : > { %523 = vst.msk [vmem:[%s837_s30 + $0x28] sm:$0xff] %vm517_vm2, %v490_v46  ;;  %v426_v50 = vadd.f32 %v829_v22, %v425_v48  ;;  %v446_v51 = vadd.f32 %v829_v22, %v445_v49  ;;  %v388_v52 = vpop.f32.mrf.mxu0  ;;  %v408_v53 = vpop.f32.mrf.mxu1 }
  0xca   : > { %531 = vst.msk [vmem:[%s837_s30 + $0x68] sm:$0xff] %vm517_vm2, %v498_v47  ;;  %v389_v54 = vadd.f32 %v829_v22, %v388_v52  ;;  %v409_v55 = vadd.f32 %v829_v22, %v408_v53 }
  0xcb   : > { %v474_v56 = vmul.f32 0.2, %v426_v50  ;;  %v482_v57 = vmul.f32 0.2, %v446_v51 }
  0xcc   : > { %v459_v58 = vmul.f32 0.2, %v389_v54  ;;  %v467_v59 = vmul.f32 0.2, %v409_v55 }
  0xcd   : > { %v506_v60 = vmax.f32 %v426_v50, %v474_v56  ;;  %v514_v61 = vmax.f32 %v446_v51, %v482_v57 }
  0xce   : > { %v491_v62 = vmax.f32 %v389_v54, %v459_v58  ;;  %v499_v63 = vmax.f32 %v409_v55, %v467_v59 }
  0xcf   : > { %539 = vst.msk [vmem:[%s837_s30 + $0xa8] sm:$0xff] %vm517_vm2, %v506_v60 }
  0xd0   : > { %547 = vst.msk [vmem:[%s837_s30 + $0xe8] sm:$0xff] %vm517_vm2, %v514_v61  ;;  %v428_v0 = vpop.f32.mrf.mxu2  ;;  %v448_v1 = vpop.f32.mrf.mxu3 }
  0xd1   : > { %524 = vst.msk [vmem:[%s837_s30 + $0x30] sm:$0xff] %vm517_vm2, %v491_v62  ;;  %v429_v2 = vadd.f32 %v829_v22, %v428_v0  ;;  %v449_v3 = vadd.f32 %v829_v22, %v448_v1  ;;  %v390_v4 = vpop.f32.mrf.mxu0  ;;  %v410_v5 = vpop.f32.mrf.mxu1 }
  0xd2   : > { %532 = vst.msk [vmem:[%s837_s30 + $0x70] sm:$0xff] %vm517_vm2, %v499_v63  ;;  %v391_v6 = vadd.f32 %v829_v22, %v390_v4  ;;  %v411_v7 = vadd.f32 %v829_v22, %v410_v5 }
  0xd3   : > { %v475_v8 = vmul.f32 0.2, %v429_v2  ;;  %v483_v9 = vmul.f32 0.2, %v449_v3 }
  0xd4   : > { %v460_v10 = vmul.f32 0.2, %v391_v6  ;;  %v468_v11 = vmul.f32 0.2, %v411_v7 }
  0xd5   : > { %v507_v12 = vmax.f32 %v429_v2, %v475_v8  ;;  %v515_v13 = vmax.f32 %v449_v3, %v483_v9 }
  0xd6   : > { %v492_v14 = vmax.f32 %v391_v6, %v460_v10  ;;  %v500_v15 = vmax.f32 %v411_v7, %v468_v11 }
  0xd7   : > { %540 = vst.msk [vmem:[%s837_s30 + $0xb0] sm:$0xff] %vm517_vm2, %v507_v12 }
  0xd8   : > { %548 = vst.msk [vmem:[%s837_s30 + $0xf0] sm:$0xff] %vm517_vm2, %v515_v13  ;;  %v430_v16 = vpop.f32.mrf.mxu2  ;;  %v450_v17 = vpop.f32.mrf.mxu3 }
  0xd9   : > { %525 = vst.msk [vmem:[%s837_s30 + $0x38] sm:$0xff] %vm517_vm2, %v492_v14  ;;  %v431_v18 = vadd.f32 %v829_v22, %v430_v16  ;;  %v451_v19 = vadd.f32 %v829_v22, %v450_v17 }
  0xda   : > { %533 = vst.msk [vmem:[%s837_s30 + $0x78] sm:$0xff] %vm517_vm2, %v500_v15 }
  0xdb   : > { %v476_v20 = vmul.f32 0.2, %v431_v18  ;;  %v484_v21 = vmul.f32 0.2, %v451_v19 }
  0xdd   : > { %v508_v23 = vmax.f32 %v431_v18, %v476_v20  ;;  %v516_v24 = vmax.f32 %v451_v19, %v484_v21 }
  0xdf   : > { %541 = vst.msk [vmem:[%s837_s30 + $0xb8] sm:$0xff] %vm517_vm2, %v508_v23 }
  0xe0   : > { %549 = vst.msk [vmem:[%s837_s30 + $0xf8] sm:$0xff] %vm517_vm2, %v516_v24 }
  0xe1 PF: > { %s13_s12 = sadd.s32 1, %s747_s12  }
  0xe2   : > { %p10_p4 = scmp.ge.s32.totalorder %s13_s12, 4  }
  0xe4   :  { %12 = sbr.rel (!%p10_p4) target bundleno = 1 (0x1), region = 62 }

// kernel: content_encoder_forward.7
= control target key start
LH: loop header
LB: loop body
LE: loop exit
PB: predicated region body
PF: predicated region fallthrough
CT: control target
= control target key end

     0   :  { %vm315_vm0 = vcmask 261120   ;;  %vm519_vm1 = vcmask 130048   ;;  %s1086_s1 = inlined_call_operand.vmem [shape: bf16[288,16], index: 1, kind: input, shape index: {}]   ;;  %s1087_s0 = inlined_call_operand.vmem [shape: bf16[128,288], index: 0, kind: input, shape index: {}]   ;;  %s1088_s2 = inlined_call_operand.vmem [shape: f32[1,16], index: 2, kind: input, shape index: {}]   ;;  %s1089_s3 = inlined_call_operand.vmem [shape: f32[128,16], index: 3, kind: output, shape index: {}]  }
   0x1   :  { %v747_v0 = vld [vmem:[%s1086_s1 + $0x38] sm:$0xff]  ;;  %v757_v1 = vld [vmem:[%s1086_s1 + $0x88] sm:$0xff]  ;;  %v746_v3 = vld [vmem:[%s1086_s1 + $0x30] sm:$0xff] }
   0x2   :  { %v755_v2 = vld [vmem:[%s1086_s1 + $0x78] sm:$0xff]  ;;  %340 = vmatpush.bf16.msra.mxu0 %v747_v0  ;;  %758 = vmatpush.bf16.msra.mxu3 %v747_v0  ;;  %v756_v4 = vld [vmem:[%s1086_s1 + $0x80] sm:$0xff]  ;;  %v754_v5 = vld [vmem:[%s1086_s1 + $0x70] sm:$0xff] }
   0x3   :  { %444 = vmatpush.bf16.msra.mxu2 %v757_v1  ;;  %389 = vmatpush.bf16.msra.mxu1 %v755_v2  ;;  %v550_v6 = vld [vmem:[%s1087_s0 + $0x8] sm:$0xf]  ;;  %v718_v7 = vld [vmem:[%s1087_s0 + $0x10] sm:$0xf0]  ;;  %v744_v11 = vld [vmem:[%s1086_s1 + $0x20] sm:$0xff] }
   0x4   :  { %v551_v8 = vor.u32 %v718_v7, %v550_v6  ;;  %v745_v9 = vld [vmem:[%s1086_s1 + $0x28] sm:$0xff]  ;;  %v752_v12 = vld [vmem:[%s1086_s1 + $0x60] sm:$0xff]  ;;  %v743_v13 = vld [vmem:[%s1086_s1 + $0x18] sm:$0xff] }
   0x5   :  { %v753_v10 = vld [vmem:[%s1086_s1 + $0x68] sm:$0xff]  ;;  %v751_v14 = vld [vmem:[%s1086_s1 + $0x58] sm:$0xff]  ;;  %v742_v15 = vld [vmem:[%s1086_s1 + $0x10] sm:$0xff] }
   0x6   :  { %341 = vmatpush.bf16.msra.mxu0 %v746_v3  ;;  %759 = vmatpush.bf16.msra.mxu3 %v746_v3  ;;  %v750_v16 = vld [vmem:[%s1086_s1 + $0x50] sm:$0xff]  ;;  %v562_v17 = vld [vmem:[%s1087_s0 + $0x20] sm:$0xf]  ;;  %v721_v18 = vld [vmem:[%s1087_s0 + $0x28] sm:$0xf0] }
   0x7   :  { %445 = vmatpush.bf16.msra.mxu2 %v756_v4  ;;  %390 = vmatpush.bf16.msra.mxu1 %v754_v5  ;;  %v563_v19 = vor.u32 %v721_v18, %v562_v17  ;;  %v741_v20 = vld [vmem:[%s1086_s1 + $0x8] sm:$0xff]  ;;  %v740_v22 = vld [vmem:[%s1086_s1] sm:$0xff]  ;;  %v614_v26 = vld [vmem:[%s1087_s0 + $0x90] sm:$0xf] }
   0x8   :  { %v749_v21 = vld [vmem:[%s1086_s1 + $0x48] sm:$0xff]  ;;  %v748_v23 = vld [vmem:[%s1086_s1 + $0x40] sm:$0xff]  ;;  %v735_v27 = vld [vmem:[%s1087_s0 + $0x98] sm:$0xf0] }
   0x9   :  { %v542_v24 = vld [vmem:[%s1087_s0] sm:$0xf]  ;;  %v717_v25 = vld [vmem:[%s1087_s0 + $0x8] sm:$0xf0]  ;;  %v716_v28 = vld [vmem:[%s1087_s0 + $0x4] sm:$0xf]  ;;  %v615_v31 = vor.u32 %v735_v27, %v614_v26 }
   0xa   :  { %708 = vmatmul.msk.bf16.vlgmr.msra.gmra.mxu2 %vm315_vm0, %v551_v8  ;;  %342 = vmatpush.bf16.msra.mxu0 %v745_v9  ;;  %v544_v29 = vld [vmem:[%s1087_s0 + $0xc] sm:$0xf0]  ;;  %v543_v30 = vor.u32 %v717_v25, %v542_v24  ;;  %v574_v33 = vld [vmem:[%s1087_s0 + $0x38] sm:$0xf]  ;;  %v724_v34 = vld [vmem:[%s1087_s0 + $0x40] sm:$0xf0] }
   0xb   :  { %760 = vmatpush.bf16.msra.mxu3 %v745_v9  ;;  %391 = vmatpush.bf16.msra.mxu1 %v753_v10  ;;  %v547_v32 = vor.u32 %v716_v28, %v544_v29  ;;  %v575_v35 = vor.u32 %v724_v34, %v574_v33  ;;  %v554_v36 = vld [vmem:[%s1087_s0 + $0x18] sm:$0xf]  ;;  %v720_v37 = vld [vmem:[%s1087_s0 + $0x20] sm:$0xf0]  ;;  %v626_v38 = vld [vmem:[%s1087_s0 + $0xa8] sm:$0xf] }
   0xc   :  { %v738_v39 = vld [vmem:[%s1087_s0 + $0xb0] sm:$0xf0]  ;;  %v719_v40 = vld [vmem:[%s1087_s0 + $0x1c] sm:$0xf]  ;;  %v556_v41 = vld [vmem:[%s1087_s0 + $0x24] sm:$0xf0]  ;;  %v555_v42 = vor.u32 %v720_v37, %v554_v36 }
   0xd   :  { %v627_v43 = vor.u32 %v738_v39, %v626_v38  ;;  %v559_v44 = vor.u32 %v719_v40, %v556_v41  ;;  %v586_v45 = vld [vmem:[%s1087_s0 + $0x50] sm:$0xf]  ;;  %v727_v46 = vld [vmem:[%s1087_s0 + $0x58] sm:$0xf0]  ;;  %v734_v50 = vld [vmem:[%s1087_s0 + $0x94] sm:$0xf] }
   0xe   :  { %343 = vmatpush.bf16.msra.mxu0 %v744_v11  ;;  %v587_v47 = vor.u32 %v727_v46, %v586_v45  ;;  %v566_v48 = vld [vmem:[%s1087_s0 + $0x30] sm:$0xf]  ;;  %v723_v49 = vld [vmem:[%s1087_s0 + $0x38] sm:$0xf0]  ;;  %v616_v51 = vld [vmem:[%s1087_s0 + $0x9c] sm:$0xf0] }
   0xf   :  { %761 = vmatpush.bf16.msra.mxu3 %v744_v11  ;;  %392 = vmatpush.bf16.msra.mxu1 %v752_v12  ;;  %v722_v52 = vld [vmem:[%s1087_s0 + $0x34] sm:$0xf]  ;;  %v568_v53 = vld [vmem:[%s1087_s0 + $0x3c] sm:$0xf0]  ;;  %v567_v54 = vor.u32 %v723_v49, %v566_v48  ;;  %v619_v55 = vor.u32 %v734_v50, %v616_v51  ;;  %v598_v57 = vld [vmem:[%s1087_s0 + $0x68] sm:$0xf] }
  0x10   :  { %v571_v56 = vor.u32 %v722_v52, %v568_v53  ;;  %v730_v58 = vld [vmem:[%s1087_s0 + $0x70] sm:$0xf0]  ;;  %v578_v60 = vld [vmem:[%s1087_s0 + $0x48] sm:$0xf]  ;;  %v737_v62 = vld [vmem:[%s1087_s0 + $0xac] sm:$0xf] }
  0x11   :  { %v599_v59 = vor.u32 %v730_v58, %v598_v57  ;;  %v726_v61 = vld [vmem:[%s1087_s0 + $0x50] sm:$0xf0]  ;;  %v628_v63 = vld [vmem:[%s1087_s0 + $0xb4] sm:$0xf0]  ;;  %v725_v0 = vld [vmem:[%s1087_s0 + $0x4c] sm:$0xf] }
  0x12   :  { %344 = vmatpush.bf16.msra.mxu0 %v743_v13  ;;  %v580_v1 = vld [vmem:[%s1087_s0 + $0x54] sm:$0xf0]  ;;  %v631_v3 = vor.u32 %v737_v62, %v628_v63  ;;  %v733_v6 = vld [vmem:[%s1087_s0 + $0x88] sm:$0xf0]  ;;  %v590_v8 = vld [vmem:[%s1087_s0 + $0x60] sm:$0xf] }
  0x13   :  { %762 = vmatpush.bf16.msra.mxu3 %v743_v13  ;;  %393 = vmatpush.bf16.msra.mxu1 %v751_v14  ;;  %v583_v4 = vor.u32 %v725_v0, %v580_v1  ;;  %v729_v9 = vld [vmem:[%s1087_s0 + $0x68] sm:$0xf0]  ;;  %v592_v11 = vld [vmem:[%s1087_s0 + $0x6c] sm:$0xf0]  ;;  %v602_v17 = vld [vmem:[%s1087_s0 + $0x78] sm:$0xf] }
  0x14   :  { %v732_v18 = vld [vmem:[%s1087_s0 + $0x80] sm:$0xf0]  ;;  %v739_v24 = vld [vmem:[%s1087_s0 + $0xb8] sm:$0xf0]  ;;  %v1004_v28 = vld [vmem:[%s1088_s2] ss:$0 sm:$0xff] }
  0x16   :  { %345 = vmatpush.bf16.msra.mxu0 %v742_v15 }
  0x17   :  { %763 = vmatpush.bf16.msra.mxu3 %v742_v15  ;;  %394 = vmatpush.bf16.msra.mxu1 %v750_v16  ;;  %v736_v15 = vld [vmem:[%s1087_s0 + $0xa0] sm:$0xf0] }
  0x1a   :  { %709 = vmatmul.msk.bf16.gmra.mxu2 %vm315_vm0, %v563_v19  ;;  %346 = vmatpush.bf16.msra.mxu0 %v741_v20  ;;  %v731_v19 = vld [vmem:[%s1087_s0 + $0x7c] sm:$0xf] }
  0x1b   :  { %764 = vmatpush.bf16.msra.mxu3 %v741_v20  ;;  %395 = vmatpush.bf16.msra.mxu1 %v749_v21  ;;  %v604_v20 = vld [vmem:[%s1087_s0 + $0x84] sm:$0xf0] }
  0x1e   :  { %347 = vmatpush.bf16.msra.mxu0 %v740_v22 }
  0x1f   :  { %765 = vmatpush.bf16.msra.mxu3 %v740_v22  ;;  %396 = vmatpush.bf16.msra.mxu1 %v748_v23  ;;  %v607_v22 = vor.u32 %v731_v19, %v604_v20 }
  0x21   :  { %348 = vmatmul.bf16.vlgmr.msra.gmra.mxu0 %v543_v30 }
  0x22   :  { %378 = vmatmul.bf16.vlgmr.msra.gmra.mxu3 %v615_v31  ;;  %397 = vmatmul.bf16.vlgmr.msra.gmra.mxu1 %v547_v32 }
  0x23   :  { %766 = vmatpush.bf16.msrb.mxu3 %v755_v2  ;;  %v579_v2 = vor.u32 %v726_v61, %v578_v60 }
  0x27   :  { %767 = vmatpush.bf16.msrb.mxu3 %v754_v5  ;;  %v610_v5 = vld [vmem:[%s1087_s0 + $0x80] sm:$0xf] }
  0x28   :  { %v611_v7 = vor.u32 %v733_v6, %v610_v5 }
  0x2a   :  { %710 = vmatmul.msk.bf16.gmra.mxu2 %vm315_vm0, %v575_v35 }
  0x2b   :  { %768 = vmatpush.bf16.msrb.mxu3 %v753_v10  ;;  %v728_v10 = vld [vmem:[%s1087_s0 + $0x64] sm:$0xf] }
  0x2c   :  { %v595_v13 = vor.u32 %v728_v10, %v592_v11 }
  0x2f   :  { %769 = vmatpush.bf16.msrb.mxu3 %v752_v12  ;;  %v591_v12 = vor.u32 %v729_v9, %v590_v8 }
  0x31   :  { %353 = vmatmul.bf16.gmra.mxu0 %v555_v42 }
  0x32   :  { %383 = vmatmul.bf16.gmra.mxu3 %v627_v43  ;;  %402 = vmatmul.bf16.gmra.mxu1 %v559_v44 }
  0x33   :  { %770 = vmatpush.bf16.msrb.mxu3 %v751_v14  ;;  %v622_v14 = vld [vmem:[%s1087_s0 + $0x98] sm:$0xf] }
  0x37   :  { %771 = vmatpush.bf16.msrb.mxu3 %v750_v16  ;;  %v623_v16 = vor.u32 %v736_v15, %v622_v14 }
  0x3a   :  { %711 = vmatmul.msk.bf16.gmra.mxu2 %vm315_vm0, %v587_v47 }
  0x3b   :  { %772 = vmatpush.bf16.msrb.mxu3 %v749_v21  ;;  %v603_v21 = vor.u32 %v732_v18, %v602_v17 }
  0x3f   :  { %773 = vmatpush.bf16.msrb.mxu3 %v748_v23  ;;  %v634_v23 = vld [vmem:[%s1087_s0 + $0xb0] sm:$0xf] }
  0x40   :  { %v635_v25 = vor.u32 %v739_v24, %v634_v23 }
  0x41   :  { %358 = vmatmul.bf16.gmra.mxu0 %v567_v54 }
  0x42   :  { %427 = vmatmul.bf16.vlgmr.msrb.gmra.mxu3 %v619_v55  ;;  %407 = vmatmul.bf16.gmra.mxu1 %v571_v56 }
  0x4a   :  { %712 = vmatmul.msk.bf16.gmra.mxu2 %vm315_vm0, %v599_v59 }
  0x51   :  { %363 = vmatmul.bf16.gmra.mxu0 %v579_v2 }
  0x52   :  { %432 = vmatmul.bf16.gmra.mxu3 %v631_v3  ;;  %412 = vmatmul.bf16.gmra.mxu1 %v583_v4 }
  0x5a   :  { %713 = vmatmul.msk.bf16.gmra.mxu2 %vm315_vm0, %v611_v7 }
  0x61   :  { %368 = vmatmul.bf16.gmra.mxu0 %v591_v12 }
  0x62   :  { %417 = vmatmul.bf16.gmra.mxu1 %v595_v13 }
  0x6a   :  { %714 = vmatmul.msk.bf16.gmra.mxu2 %vm315_vm0, %v623_v16 }
  0x71   :  { %373 = vmatmul.bf16.gmra.mxu0 %v603_v21 }
  0x72   :  { %422 = vmatmul.bf16.gmra.mxu1 %v607_v22 }
  0x7a   :  { %715 = vmatmul.msk.bf16.gmra.mxu2 %vm315_vm0, %v635_v25 }
  0x8d   :  { %v447_v26 = vpop.f32.mrf.mxu2 }
  0x95   :  { %v449_v27 = vpop.f32.mrf.mxu2 }
  0x9d   :  { %v452_v29 = vpop.f32.mrf.mxu2 }
  0x9e   :  { %v349_v30 = vpop.f32.mrf.mxu0 }
  0x9f   :  { %v350_v31 = vadd.f32 %v1004_v28, %v349_v30  ;;  %v398_v32 = vpop.f32.mrf.mxu1 }
  0xa1   :  { %v399_v33 = vadd.f32 %v398_v32, %v350_v31 }
  0xa3   :  { %v448_v34 = vadd.f32 %v447_v26, %v399_v33 }
  0xa5   :  { %v487_v35 = vmul.f32 0.2, %v448_v34  ;;  %v454_v36 = vpop.f32.mrf.mxu2  ;;  %v379_v58 = vpop.f32.mrf.mxu3 }
  0xa6   :  { %v351_v37 = vpop.f32.mrf.mxu0 }
  0xa7   :  { %v503_v38 = vmax.f32 %v448_v34, %v487_v35  ;;  %v352_v39 = vadd.f32 %v1004_v28, %v351_v37  ;;  %v400_v40 = vpop.f32.mrf.mxu1 }
  0xa9   :  { %520 = vst.msk [vmem:[%s1089_s3] sm:$0xff] %vm519_vm1, %v503_v38  ;;  %v401_v41 = vadd.f32 %v400_v40, %v352_v39 }
  0xab   :  { %v450_v42 = vadd.f32 %v449_v27, %v401_v41 }
  0xad   :  { %v488_v43 = vmul.f32 0.2, %v450_v42  ;;  %v457_v44 = vpop.f32.mrf.mxu2  ;;  %v381_v4 = vpop.f32.mrf.mxu3 }
  0xae   :  { %v354_v45 = vpop.f32.mrf.mxu0 }
  0xaf   :  { %v504_v46 = vmax.f32 %v450_v42, %v488_v43  ;;  %v355_v47 = vadd.f32 %v1004_v28, %v354_v45  ;;  %v403_v48 = vpop.f32.mrf.mxu1 }
  0xb1   :  { %521 = vst.msk [vmem:[%s1089_s3 + $0x8] sm:$0xff] %vm519_vm1, %v504_v46  ;;  %v404_v49 = vadd.f32 %v403_v48, %v355_v47  ;;  %v380_v47 = vadd.f32 %v1004_v28, %v379_v58 }
  0xb3   :  { %v453_v50 = vadd.f32 %v452_v29, %v404_v49 }
  0xb5   :  { %v489_v51 = vmul.f32 0.2, %v453_v50  ;;  %v459_v52 = vpop.f32.mrf.mxu2  ;;  %v384_v16 = vpop.f32.mrf.mxu3 }
  0xb6   :  { %v356_v53 = vpop.f32.mrf.mxu0 }
  0xb7   :  { %v505_v54 = vmax.f32 %v453_v50, %v489_v51  ;;  %v357_v55 = vadd.f32 %v1004_v28, %v356_v53  ;;  %v405_v56 = vpop.f32.mrf.mxu1 }
  0xb9   :  { %522 = vst.msk [vmem:[%s1089_s3 + $0x10] sm:$0xff] %vm519_vm1, %v505_v54  ;;  %v406_v57 = vadd.f32 %v405_v56, %v357_v55 }
  0xbb   :  { %v455_v59 = vadd.f32 %v454_v36, %v406_v57 }
  0xbd   :  { %v490_v60 = vmul.f32 0.2, %v455_v59  ;;  %v462_v61 = vpop.f32.mrf.mxu2  ;;  %v386_v29 = vpop.f32.mrf.mxu3 }
  0xbe   :  { %v359_v62 = vpop.f32.mrf.mxu0 }
  0xbf   :  { %v506_v63 = vmax.f32 %v455_v59, %v490_v60  ;;  %v360_v0 = vadd.f32 %v1004_v28, %v359_v62  ;;  %v408_v1 = vpop.f32.mrf.mxu1  ;;  %v382_v60 = vadd.f32 %v1004_v28, %v381_v4 }
  0xc1   :  { %523 = vst.msk [vmem:[%s1089_s3 + $0x18] sm:$0xff] %vm519_vm1, %v506_v63  ;;  %v409_v2 = vadd.f32 %v408_v1, %v360_v0 }
  0xc3   :  { %v458_v3 = vadd.f32 %v457_v44, %v409_v2 }
  0xc5   :  { %v491_v5 = vmul.f32 0.2, %v458_v3  ;;  %v464_v6 = vpop.f32.mrf.mxu2  ;;  %v428_v39 = vpop.f32.mrf.mxu3 }
  0xc6   :  { %v361_v7 = vpop.f32.mrf.mxu0  ;;  %v429_v50 = vadd.f32 %v428_v39, %v380_v47 }
  0xc7   :  { %v507_v8 = vmax.f32 %v458_v3, %v491_v5  ;;  %v362_v9 = vadd.f32 %v1004_v28, %v361_v7  ;;  %v410_v10 = vpop.f32.mrf.mxu1 }
  0xc9   :  { %524 = vst.msk [vmem:[%s1089_s3 + $0x20] sm:$0xff] %vm519_vm1, %v507_v8  ;;  %v411_v11 = vadd.f32 %v410_v10, %v362_v9  ;;  %v385_v9 = vadd.f32 %v1004_v28, %v384_v16  ;;  %v387_v16 = vadd.f32 %v1004_v28, %v386_v29 }
  0xcb   :  { %v460_v12 = vadd.f32 %v459_v52, %v411_v11 }
  0xcd   :  { %v492_v13 = vmul.f32 0.2, %v460_v12  ;;  %v467_v14 = vpop.f32.mrf.mxu2  ;;  %v430_v51 = vpop.f32.mrf.mxu3 }
  0xce   :  { %v364_v15 = vpop.f32.mrf.mxu0  ;;  %v431_v0 = vadd.f32 %v430_v51, %v382_v60 }
  0xcf   :  { %v508_v17 = vmax.f32 %v460_v12, %v492_v13  ;;  %v365_v18 = vadd.f32 %v1004_v28, %v364_v15  ;;  %v413_v19 = vpop.f32.mrf.mxu1 }
  0xd1   :  { %525 = vst.msk [vmem:[%s1089_s3 + $0x28] sm:$0xff] %vm519_vm1, %v508_v17  ;;  %v414_v20 = vadd.f32 %v413_v19, %v365_v18 }
  0xd3   :  { %v463_v21 = vadd.f32 %v462_v61, %v414_v20 }
  0xd5   :  { %v493_v22 = vmul.f32 0.2, %v463_v21  ;;  %v469_v23 = vpop.f32.mrf.mxu2  ;;  %v433_v4 = vpop.f32.mrf.mxu3 }
  0xd6   :  { %v366_v24 = vpop.f32.mrf.mxu0 }
  0xd7   :  { %v509_v25 = vmax.f32 %v463_v21, %v493_v22  ;;  %v367_v26 = vadd.f32 %v1004_v28, %v366_v24  ;;  %v415_v27 = vpop.f32.mrf.mxu1 }
  0xd9   :  { %526 = vst.msk [vmem:[%s1089_s3 + $0x30] sm:$0xff] %vm519_vm1, %v509_v25  ;;  %v416_v30 = vadd.f32 %v415_v27, %v367_v26 }
  0xdb   :  { %v465_v31 = vadd.f32 %v464_v6, %v416_v30 }
  0xdd   :  { %v494_v32 = vmul.f32 0.2, %v465_v31  ;;  %v472_v33 = vpop.f32.mrf.mxu2  ;;  %v435_v21 = vpop.f32.mrf.mxu3 }
  0xde   :  { %v369_v34 = vpop.f32.mrf.mxu0 }
  0xdf   :  { %v510_v35 = vmax.f32 %v465_v31, %v494_v32  ;;  %v370_v36 = vadd.f32 %v1004_v28, %v369_v34  ;;  %v418_v37 = vpop.f32.mrf.mxu1 }
  0xe1   :  { %527 = vst.msk [vmem:[%s1089_s3 + $0x38] sm:$0xff] %vm519_vm1, %v510_v35  ;;  %v419_v38 = vadd.f32 %v418_v37, %v370_v36 }
  0xe3   :  { %v468_v40 = vadd.f32 %v467_v14, %v419_v38  ;;  %v434_v14 = vadd.f32 %v433_v4, %v385_v9 }
  0xe5   :  { %v495_v41 = vmul.f32 0.2, %v468_v40  ;;  %v474_v42 = vpop.f32.mrf.mxu2 }
  0xe6   :  { %v371_v43 = vpop.f32.mrf.mxu0 }
  0xe7   :  { %v511_v44 = vmax.f32 %v468_v40, %v495_v41  ;;  %v372_v45 = vadd.f32 %v1004_v28, %v371_v43  ;;  %v420_v46 = vpop.f32.mrf.mxu1 }
  0xe9   :  { %528 = vst.msk [vmem:[%s1089_s3 + $0x40] sm:$0xff] %vm519_vm1, %v511_v44  ;;  %v421_v48 = vadd.f32 %v420_v46, %v372_v45 }
  0xeb   :  { %v470_v49 = vadd.f32 %v469_v23, %v421_v48  ;;  %v436_v23 = vadd.f32 %v435_v21, %v387_v16 }
  0xed   :  { %v496_v52 = vmul.f32 0.2, %v470_v49  ;;  %v477_v53 = vpop.f32.mrf.mxu2 }
  0xee   :  { %v478_v54 = vadd.f32 %v477_v53, %v429_v50  ;;  %v374_v55 = vpop.f32.mrf.mxu0 }
  0xef   :  { %v512_v56 = vmax.f32 %v470_v49, %v496_v52  ;;  %v375_v57 = vadd.f32 %v1004_v28, %v374_v55  ;;  %v423_v59 = vpop.f32.mrf.mxu1 }
  0xf0   :  { %v499_v58 = vmul.f32 0.2, %v478_v54 }
  0xf1   :  { %529 = vst.msk [vmem:[%s1089_s3 + $0x48] sm:$0xff] %vm519_vm1, %v512_v56  ;;  %v424_v61 = vadd.f32 %v423_v59, %v375_v57 }
  0xf2   :  { %v515_v62 = vmax.f32 %v478_v54, %v499_v58 }
  0xf3   :  { %v473_v63 = vadd.f32 %v472_v33, %v424_v61 }
  0xf4   :  { %532 = vst.msk [vmem:[%s1089_s3 + $0x60] sm:$0xff] %vm519_vm1, %v515_v62 }
  0xf5   :  { %v497_v1 = vmul.f32 0.2, %v473_v63  ;;  %v479_v2 = vpop.f32.mrf.mxu2 }
  0xf6   :  { %v480_v3 = vadd.f32 %v479_v2, %v431_v0  ;;  %v376_v5 = vpop.f32.mrf.mxu0 }
  0xf7   :  { %v513_v6 = vmax.f32 %v473_v63, %v497_v1  ;;  %v377_v7 = vadd.f32 %v1004_v28, %v376_v5  ;;  %v425_v8 = vpop.f32.mrf.mxu1 }
  0xf8   :  { %v500_v10 = vmul.f32 0.2, %v480_v3 }
  0xf9   :  { %530 = vst.msk [vmem:[%s1089_s3 + $0x50] sm:$0xff] %vm519_vm1, %v513_v6  ;;  %v426_v11 = vadd.f32 %v425_v8, %v377_v7 }
  0xfa   :  { %v516_v12 = vmax.f32 %v480_v3, %v500_v10 }
  0xfb   :  { %v475_v13 = vadd.f32 %v474_v42, %v426_v11 }
  0xfc   :  { %533 = vst.msk [vmem:[%s1089_s3 + $0x68] sm:$0xff] %vm519_vm1, %v516_v12 }
  0xfd   :  { %v498_v15 = vmul.f32 0.2, %v475_v13  ;;  %v482_v17 = vpop.f32.mrf.mxu2 }
  0xfe   :  { %v483_v18 = vadd.f32 %v482_v17, %v434_v14 }
  0xff   :  { %v514_v19 = vmax.f32 %v475_v13, %v498_v15 }
 0x100   :  { %v501_v20 = vmul.f32 0.2, %v483_v18 }
 0x101   :  { %531 = vst.msk [vmem:[%s1089_s3 + $0x58] sm:$0xff] %vm519_vm1, %v514_v19 }
 0x102   :  { %v517_v22 = vmax.f32 %v483_v18, %v501_v20 }
 0x104   :  { %534 = vst.msk [vmem:[%s1089_s3 + $0x70] sm:$0xff] %vm519_vm1, %v517_v22 }
 0x105   :  { %v484_v24 = vpop.f32.mrf.mxu2 }
 0x106   :  { %v485_v25 = vadd.f32 %v484_v24, %v436_v23 }
 0x108   :  { %v502_v26 = vmul.f32 0.2, %v485_v25 }
 0x10a   :  { %v518_v27 = vmax.f32 %v485_v25, %v502_v26 }
 0x10c   :  { %535 = vst.msk [vmem:[%s1089_s3 + $0x78] sm:$0xff] %vm519_vm1, %v518_v27 }

// kernel: content_encoder_forward.8
= control target key start
LH: loop header
LB: loop body
LE: loop exit
PB: predicated region body
PF: predicated region fallthrough
CT: control target
= control target key end

     0   :  { %vm179_vm0 = vcmask 130048   ;;  %s733_s1 = inlined_call_operand.vmem [shape: bf16[144,16], index: 1, kind: input, shape index: {}]   ;;  %s734_s0 = inlined_call_operand.vmem [shape: bf16[128,144], index: 0, kind: input, shape index: {}]   ;;  %s735_s2 = inlined_call_operand.vmem [shape: f32[1,16], index: 2, kind: input, shape index: {}]   ;;  %s736_s3 = inlined_call_operand.vmem [shape: f32[128,16], index: 3, kind: output, shape index: {}]  }
   0x1   :  { %v485_v0 = vld [vmem:[%s733_s1 + $0x38] sm:$0xff]  ;;  %v486_v1 = vld [vmem:[%s733_s1 + $0x40] sm:$0xff]  ;;  %v358_v3 = vld [vmem:[%s734_s0 + $0x8] sm:$0xf0] }
   0x2   :  { %v462_v2 = vld [vmem:[%s734_s0 + $0x4] sm:$0xf]  ;;  %204 = vmatpush.bf16.msra.mxu0 %v485_v0  ;;  %487 = vmatpush.bf16.msra.mxu2 %v485_v0  ;;  %v484_v5 = vld [vmem:[%s733_s1 + $0x30] sm:$0xff]  ;;  %v483_v6 = vld [vmem:[%s733_s1 + $0x28] sm:$0xff] }
   0x3   :  { %v361_v4 = vor.u32 %v462_v2, %v358_v3  ;;  %260 = vmatpush.bf16.msra.mxu1 %v486_v1  ;;  %495 = vmatpush.bf16.msra.mxu3 %v486_v1  ;;  %v472_v7 = vld [vmem:[%s734_s0 + $0x54] sm:$0xf]  ;;  %v398_v8 = vld [vmem:[%s734_s0 + $0x58] sm:$0xf0]  ;;  %v482_v10 = vld [vmem:[%s733_s1 + $0x20] sm:$0xff] }
   0x4   :  { %v401_v9 = vor.u32 %v472_v7, %v398_v8  ;;  %v481_v11 = vld [vmem:[%s733_s1 + $0x18] sm:$0xff]  ;;  %v464_v12 = vld [vmem:[%s734_s0 + $0x14] sm:$0xf]  ;;  %v479_v16 = vld [vmem:[%s733_s1 + $0x8] sm:$0xff] }
   0x5   :  { %v366_v13 = vld [vmem:[%s734_s0 + $0x18] sm:$0xf0]  ;;  %v480_v15 = vld [vmem:[%s733_s1 + $0x10] sm:$0xff]  ;;  %v474_v17 = vld [vmem:[%s734_s0 + $0x64] sm:$0xf] }
   0x6   :  { %454 = vmatmul.msk.bf16.vlgmr.msra.gmra.mxu1 %vm179_vm0, %v361_v4  ;;  %205 = vmatpush.bf16.msra.mxu0 %v484_v5  ;;  %v369_v14 = vor.u32 %v464_v12, %v366_v13  ;;  %v406_v18 = vld [vmem:[%s734_s0 + $0x68] sm:$0xf0]  ;;  %v478_v20 = vld [vmem:[%s733_s1] sm:$0xff]  ;;  %v463_v22 = vld [vmem:[%s734_s0 + $0x4] sm:$0xf0] }
   0x7   :  { %488 = vmatpush.bf16.msra.mxu2 %v484_v5  ;;  %459 = vmatmul.msk.bf16.vlgmr.msra.gmra.mxu3 %vm179_vm0, %v401_v9  ;;  %v409_v19 = vor.u32 %v474_v17, %v406_v18  ;;  %v356_v21 = vld [vmem:[%s734_s0] sm:$0xf]  ;;  %v471_v24 = vld [vmem:[%s734_s0 + $0x44] sm:$0xf0]  ;;  %v466_v27 = vld [vmem:[%s734_s0 + $0x24] sm:$0xf] }
   0x8   :  { %v388_v23 = vld [vmem:[%s734_s0 + $0x40] sm:$0xf]  ;;  %v357_v25 = vor.u32 %v463_v22, %v356_v21  ;;  %v374_v28 = vld [vmem:[%s734_s0 + $0x28] sm:$0xf0]  ;;  %v476_v30 = vld [vmem:[%s734_s0 + $0x74] sm:$0xf] }
   0x9   :  { %v389_v26 = vor.u32 %v471_v24, %v388_v23  ;;  %v377_v29 = vor.u32 %v466_v27, %v374_v28  ;;  %v414_v31 = vld [vmem:[%s734_s0 + $0x78] sm:$0xf0]  ;;  %v364_v33 = vld [vmem:[%s734_s0 + $0x10] sm:$0xf]  ;;  %v465_v34 = vld [vmem:[%s734_s0 + $0x14] sm:$0xf0] }
   0xa   :  { %206 = vmatpush.bf16.msra.mxu0 %v483_v6  ;;  %v417_v32 = vor.u32 %v476_v30, %v414_v31  ;;  %v396_v35 = vld [vmem:[%s734_s0 + $0x50] sm:$0xf]  ;;  %v473_v36 = vld [vmem:[%s734_s0 + $0x54] sm:$0xf0]  ;;  %v365_v37 = vor.u32 %v465_v34, %v364_v33  ;;  %v468_v39 = vld [vmem:[%s734_s0 + $0x34] sm:$0xf] }
   0xb   :  { %489 = vmatpush.bf16.msra.mxu2 %v483_v6  ;;  %v397_v38 = vor.u32 %v473_v36, %v396_v35  ;;  %v382_v40 = vld [vmem:[%s734_s0 + $0x38] sm:$0xf0]  ;;  %v372_v42 = vld [vmem:[%s734_s0 + $0x20] sm:$0xf]  ;;  %v467_v43 = vld [vmem:[%s734_s0 + $0x24] sm:$0xf0] }
   0xc   :  { %v385_v41 = vor.u32 %v468_v39, %v382_v40  ;;  %v404_v44 = vld [vmem:[%s734_s0 + $0x60] sm:$0xf]  ;;  %v475_v45 = vld [vmem:[%s734_s0 + $0x64] sm:$0xf0]  ;;  %v373_v46 = vor.u32 %v467_v43, %v372_v42  ;;  %v470_v48 = vld [vmem:[%s734_s0 + $0x44] sm:$0xf] }
   0xd   :  { %v405_v47 = vor.u32 %v475_v45, %v404_v44  ;;  %v390_v49 = vld [vmem:[%s734_s0 + $0x48] sm:$0xf0]  ;;  %v380_v51 = vld [vmem:[%s734_s0 + $0x30] sm:$0xf]  ;;  %v469_v52 = vld [vmem:[%s734_s0 + $0x34] sm:$0xf0] }
   0xe   :  { %207 = vmatpush.bf16.msra.mxu0 %v482_v10  ;;  %v393_v50 = vor.u32 %v470_v48, %v390_v49  ;;  %v412_v53 = vld [vmem:[%s734_s0 + $0x70] sm:$0xf]  ;;  %v477_v54 = vld [vmem:[%s734_s0 + $0x74] sm:$0xf0]  ;;  %v381_v55 = vor.u32 %v469_v52, %v380_v51  ;;  %v651_v61 = vld [vmem:[%s735_s2] ss:$0 sm:$0xff] }
   0xf   :  { %490 = vmatpush.bf16.msra.mxu2 %v482_v10  ;;  %v413_v56 = vor.u32 %v477_v54, %v412_v53 }
  0x12   :  { %208 = vmatpush.bf16.msra.mxu0 %v481_v11 }
  0x13   :  { %491 = vmatpush.bf16.msra.mxu2 %v481_v11 }
  0x16   :  { %455 = vmatmul.msk.bf16.gmra.mxu1 %vm179_vm0, %v369_v14  ;;  %209 = vmatpush.bf16.msra.mxu0 %v480_v15 }
  0x17   :  { %492 = vmatpush.bf16.msra.mxu2 %v480_v15  ;;  %460 = vmatmul.msk.bf16.gmra.mxu3 %vm179_vm0, %v409_v19 }
  0x1a   :  { %210 = vmatpush.bf16.msra.mxu0 %v479_v16 }
  0x1b   :  { %493 = vmatpush.bf16.msra.mxu2 %v479_v16 }
  0x1e   :  { %211 = vmatpush.bf16.msra.mxu0 %v478_v20 }
  0x1f   :  { %494 = vmatpush.bf16.msra.mxu2 %v478_v20 }
  0x21   :  { %212 = vmatmul.bf16.vlgmr.msra.gmra.mxu0 %v357_v25 }
  0x22   :  { %232 = vmatmul.bf16.vlgmr.msra.gmra.mxu2 %v389_v26 }
  0x26   :  { %456 = vmatmul.msk.bf16.gmra.mxu1 %vm179_vm0, %v377_v29 }
  0x27   :  { %461 = vmatmul.msk.bf16.gmra.mxu3 %vm179_vm0, %v417_v32 }
  0x31   :  { %217 = vmatmul.bf16.gmra.mxu0 %v365_v37 }
  0x32   :  { %237 = vmatmul.bf16.gmra.mxu2 %v397_v38 }
  0x36   :  { %457 = vmatmul.msk.bf16.gmra.mxu1 %vm179_vm0, %v385_v41 }
  0x41   :  { %222 = vmatmul.bf16.gmra.mxu0 %v373_v46 }
  0x42   :  { %242 = vmatmul.bf16.gmra.mxu2 %v405_v47 }
  0x46   :  { %458 = vmatmul.msk.bf16.gmra.mxu1 %vm179_vm0, %v393_v50 }
  0x51   :  { %227 = vmatmul.bf16.gmra.mxu0 %v381_v55 }
  0x52   :  { %247 = vmatmul.bf16.gmra.mxu2 %v413_v56 }
  0x83   :  { %v262_v57 = vpop.f32.mrf.mxu1 }
  0x8a   :  { %v287_v12 = vpop.f32.mrf.mxu3 }
  0x8b   :  { %v264_v58 = vpop.f32.mrf.mxu1 }
  0x92   :  { %v289_v23 = vpop.f32.mrf.mxu3 }
  0x93   :  { %v267_v59 = vpop.f32.mrf.mxu1 }
  0x9a   :  { %v292_v37 = vpop.f32.mrf.mxu3 }
  0x9b   :  { %v269_v60 = vpop.f32.mrf.mxu1 }
  0x9e   :  { %v213_v62 = vpop.f32.mrf.mxu0 }
  0x9f   :  { %v214_v63 = vadd.f32 %v651_v61, %v213_v62 }
  0xa1   :  { %v263_v0 = vadd.f32 %v262_v57, %v214_v63 }
  0xa2   :  { %v294_v56 = vpop.f32.mrf.mxu3 }
  0xa3   :  { %v302_v1 = vmul.f32 0.2, %v263_v0  ;;  %v272_v2 = vpop.f32.mrf.mxu1 }
  0xa5   :  { %v318_v3 = vmax.f32 %v263_v0, %v302_v1  ;;  %v233_v4 = vpop.f32.mrf.mxu2 }
  0xa6   :  { %v215_v5 = vpop.f32.mrf.mxu0  ;;  %v234_v38 = vadd.f32 %v651_v61, %v233_v4 }
  0xa7   :  { %334 = vst.msk [vmem:[%s736_s3] sm:$0xff] %vm179_vm0, %v318_v3  ;;  %v216_v6 = vadd.f32 %v651_v61, %v215_v5 }
  0xa9   :  { %v265_v7 = vadd.f32 %v264_v58, %v216_v6 }
  0xab   :  { %v303_v8 = vmul.f32 0.2, %v265_v7  ;;  %v274_v9 = vpop.f32.mrf.mxu1 }
  0xad   :  { %v319_v10 = vmax.f32 %v265_v7, %v303_v8  ;;  %v235_v11 = vpop.f32.mrf.mxu2 }
  0xae   :  { %v218_v13 = vpop.f32.mrf.mxu0  ;;  %v236_v53 = vadd.f32 %v651_v61, %v235_v11 }
  0xaf   :  { %335 = vst.msk [vmem:[%s736_s3 + $0x8] sm:$0xff] %vm179_vm0, %v319_v10  ;;  %v219_v14 = vadd.f32 %v651_v61, %v218_v13  ;;  %v297_v10 = vpop.f32.mrf.mxu3 }
  0xb1   :  { %v268_v15 = vadd.f32 %v267_v59, %v219_v14 }
  0xb3   :  { %v304_v16 = vmul.f32 0.2, %v268_v15  ;;  %v277_v17 = vpop.f32.mrf.mxu1 }
  0xb5   :  { %v320_v18 = vmax.f32 %v268_v15, %v304_v16  ;;  %v238_v19 = vpop.f32.mrf.mxu2 }
  0xb6   :  { %v239_v20 = vadd.f32 %v651_v61, %v238_v19  ;;  %v220_v21 = vpop.f32.mrf.mxu0 }
  0xb7   :  { %336 = vst.msk [vmem:[%s736_s3 + $0x10] sm:$0xff] %vm179_vm0, %v320_v18  ;;  %v221_v22 = vadd.f32 %v651_v61, %v220_v21 }
  0xb8   :  { %v288_v24 = vadd.f32 %v287_v12, %v239_v20 }
  0xb9   :  { %v270_v25 = vadd.f32 %v269_v60, %v221_v22 }
  0xba   :  { %v312_v26 = vmul.f32 0.2, %v288_v24 }
  0xbb   :  { %v305_v27 = vmul.f32 0.2, %v270_v25  ;;  %v279_v28 = vpop.f32.mrf.mxu1 }
  0xbc   :  { %v328_v29 = vmax.f32 %v288_v24, %v312_v26 }
  0xbd   :  { %v321_v30 = vmax.f32 %v270_v25, %v305_v27  ;;  %v240_v31 = vpop.f32.mrf.mxu2 }
  0xbe   :  { %344 = vst.msk [vmem:[%s736_s3 + $0x50] sm:$0xff] %vm179_vm0, %v328_v29  ;;  %v241_v32 = vadd.f32 %v651_v61, %v240_v31  ;;  %v223_v33 = vpop.f32.mrf.mxu0 }
  0xbf   :  { %337 = vst.msk [vmem:[%s736_s3 + $0x18] sm:$0xff] %vm179_vm0, %v321_v30  ;;  %v224_v34 = vadd.f32 %v651_v61, %v223_v33 }
  0xc0   :  { %v290_v35 = vadd.f32 %v289_v23, %v241_v32  ;;  %v299_v23 = vpop.f32.mrf.mxu3 }
  0xc1   :  { %v273_v36 = vadd.f32 %v272_v2, %v224_v34 }
  0xc2   :  { %v313_v39 = vmul.f32 0.2, %v290_v35 }
  0xc3   :  { %v306_v40 = vmul.f32 0.2, %v273_v36  ;;  %v282_v41 = vpop.f32.mrf.mxu1 }
  0xc4   :  { %v329_v42 = vmax.f32 %v290_v35, %v313_v39  ;;  %v283_v43 = vadd.f32 %v282_v41, %v234_v38 }
  0xc5   :  { %v322_v44 = vmax.f32 %v273_v36, %v306_v40  ;;  %v243_v45 = vpop.f32.mrf.mxu2 }
  0xc6   :  { %345 = vst.msk [vmem:[%s736_s3 + $0x58] sm:$0xff] %vm179_vm0, %v329_v42  ;;  %v310_v46 = vmul.f32 0.2, %v283_v43  ;;  %v244_v47 = vadd.f32 %v651_v61, %v243_v45  ;;  %v225_v48 = vpop.f32.mrf.mxu0 }
  0xc7   :  { %338 = vst.msk [vmem:[%s736_s3 + $0x20] sm:$0xff] %vm179_vm0, %v322_v44  ;;  %v226_v49 = vadd.f32 %v651_v61, %v225_v48 }
  0xc8   :  { %v326_v50 = vmax.f32 %v283_v43, %v310_v46  ;;  %v293_v51 = vadd.f32 %v292_v37, %v244_v47 }
  0xc9   :  { %v275_v52 = vadd.f32 %v274_v9, %v226_v49 }
  0xca   :  { %342 = vst.msk [vmem:[%s736_s3 + $0x40] sm:$0xff] %vm179_vm0, %v326_v50  ;;  %v314_v54 = vmul.f32 0.2, %v293_v51 }
  0xcb   :  { %v307_v55 = vmul.f32 0.2, %v275_v52  ;;  %v284_v57 = vpop.f32.mrf.mxu1 }
  0xcc   :  { %v330_v58 = vmax.f32 %v293_v51, %v314_v54  ;;  %v285_v59 = vadd.f32 %v284_v57, %v236_v53 }
  0xcd   :  { %v323_v60 = vmax.f32 %v275_v52, %v307_v55  ;;  %v245_v62 = vpop.f32.mrf.mxu2 }
  0xce   :  { %346 = vst.msk [vmem:[%s736_s3 + $0x60] sm:$0xff] %vm179_vm0, %v330_v58  ;;  %v311_v63 = vmul.f32 0.2, %v285_v59  ;;  %v246_v0 = vadd.f32 %v651_v61, %v245_v62  ;;  %v228_v1 = vpop.f32.mrf.mxu0 }
  0xcf   :  { %339 = vst.msk [vmem:[%s736_s3 + $0x28] sm:$0xff] %vm179_vm0, %v323_v60  ;;  %v229_v2 = vadd.f32 %v651_v61, %v228_v1 }
  0xd0   :  { %v327_v3 = vmax.f32 %v285_v59, %v311_v63  ;;  %v295_v4 = vadd.f32 %v294_v56, %v246_v0 }
  0xd1   :  { %v278_v5 = vadd.f32 %v277_v17, %v229_v2 }
  0xd2   :  { %343 = vst.msk [vmem:[%s736_s3 + $0x48] sm:$0xff] %vm179_vm0, %v327_v3  ;;  %v315_v6 = vmul.f32 0.2, %v295_v4 }
  0xd3   :  { %v308_v7 = vmul.f32 0.2, %v278_v5 }
  0xd4   :  { %v331_v8 = vmax.f32 %v295_v4, %v315_v6 }
  0xd5   :  { %v324_v9 = vmax.f32 %v278_v5, %v308_v7  ;;  %v248_v11 = vpop.f32.mrf.mxu2 }
  0xd6   :  { %347 = vst.msk [vmem:[%s736_s3 + $0x68] sm:$0xff] %vm179_vm0, %v331_v8  ;;  %v249_v12 = vadd.f32 %v651_v61, %v248_v11  ;;  %v230_v13 = vpop.f32.mrf.mxu0 }
  0xd7   :  { %340 = vst.msk [vmem:[%s736_s3 + $0x30] sm:$0xff] %vm179_vm0, %v324_v9  ;;  %v231_v14 = vadd.f32 %v651_v61, %v230_v13 }
  0xd8   :  { %v298_v15 = vadd.f32 %v297_v10, %v249_v12 }
  0xd9   :  { %v280_v16 = vadd.f32 %v279_v28, %v231_v14 }
  0xda   :  { %v316_v17 = vmul.f32 0.2, %v298_v15 }
  0xdb   :  { %v309_v18 = vmul.f32 0.2, %v280_v16 }
  0xdc   :  { %v332_v19 = vmax.f32 %v298_v15, %v316_v17 }
  0xdd   :  { %v325_v20 = vmax.f32 %v280_v16, %v309_v18  ;;  %v250_v21 = vpop.f32.mrf.mxu2 }
  0xde   :  { %348 = vst.msk [vmem:[%s736_s3 + $0x70] sm:$0xff] %vm179_vm0, %v332_v19  ;;  %v251_v22 = vadd.f32 %v651_v61, %v250_v21 }
  0xdf   :  { %341 = vst.msk [vmem:[%s736_s3 + $0x38] sm:$0xff] %vm179_vm0, %v325_v20 }
  0xe0   :  { %v300_v24 = vadd.f32 %v299_v23, %v251_v22 }
  0xe2   :  { %v317_v25 = vmul.f32 0.2, %v300_v24 }
  0xe4   :  { %v333_v26 = vmax.f32 %v300_v24, %v317_v25 }
  0xe6   :  { %349 = vst.msk [vmem:[%s736_s3 + $0x78] sm:$0xff] %vm179_vm0, %v333_v26 }

// kernel: content_encoder_forward.9
= control target key start
LH: loop header
LB: loop body
LE: loop exit
PB: predicated region body
PF: predicated region fallthrough
CT: control target
= control target key end

     0   :  { %vm182_vm0 = vcmask 130048   ;;  %s849_s1 = inlined_call_operand.vmem [shape: bf16[144,16], index: 1, kind: input, shape index: {}]   ;;  %s850_s0 = inlined_call_operand.vmem [shape: bf16[128,144], index: 0, kind: input, shape index: {}]   ;;  %s851_s2 = inlined_call_operand.vmem [shape: f32[1,16], index: 2, kind: input, shape index: {}]   ;;  %s852_s3 = inlined_call_operand.vmem [shape: f32[128,16], index: 3, kind: input, shape index: {}]   ;;  %s853_s4 = inlined_call_operand.vmem [shape: f32[128,16], index: 4, kind: output, shape index: {}]  }
   0x1   :  { %v536_v0 = vld [vmem:[%s849_s1 + $0x38] sm:$0xff]  ;;  %v537_v1 = vld [vmem:[%s849_s1 + $0x40] sm:$0xff]  ;;  %v409_v3 = vld [vmem:[%s850_s0 + $0x8] sm:$0xf0] }
   0x2   :  { %v513_v2 = vld [vmem:[%s850_s0 + $0x4] sm:$0xf]  ;;  %207 = vmatpush.bf16.msra.mxu0 %v536_v0  ;;  %538 = vmatpush.bf16.msra.mxu2 %v536_v0  ;;  %v535_v5 = vld [vmem:[%s849_s1 + $0x30] sm:$0xff]  ;;  %v534_v6 = vld [vmem:[%s849_s1 + $0x28] sm:$0xff] }
   0x3   :  { %v412_v4 = vor.u32 %v513_v2, %v409_v3  ;;  %263 = vmatpush.bf16.msra.mxu1 %v537_v1  ;;  %546 = vmatpush.bf16.msra.mxu3 %v537_v1  ;;  %v523_v7 = vld [vmem:[%s850_s0 + $0x54] sm:$0xf]  ;;  %v449_v8 = vld [vmem:[%s850_s0 + $0x58] sm:$0xf0]  ;;  %v533_v10 = vld [vmem:[%s849_s1 + $0x20] sm:$0xff] }
   0x4   :  { %v452_v9 = vor.u32 %v523_v7, %v449_v8  ;;  %v532_v11 = vld [vmem:[%s849_s1 + $0x18] sm:$0xff]  ;;  %v515_v12 = vld [vmem:[%s850_s0 + $0x14] sm:$0xf]  ;;  %v530_v16 = vld [vmem:[%s849_s1 + $0x8] sm:$0xff] }
   0x5   :  { %v417_v13 = vld [vmem:[%s850_s0 + $0x18] sm:$0xf0]  ;;  %v531_v15 = vld [vmem:[%s849_s1 + $0x10] sm:$0xff]  ;;  %v525_v17 = vld [vmem:[%s850_s0 + $0x64] sm:$0xf] }
   0x6   :  { %505 = vmatmul.msk.bf16.vlgmr.msra.gmra.mxu1 %vm182_vm0, %v412_v4  ;;  %208 = vmatpush.bf16.msra.mxu0 %v535_v5  ;;  %v420_v14 = vor.u32 %v515_v12, %v417_v13  ;;  %v457_v18 = vld [vmem:[%s850_s0 + $0x68] sm:$0xf0]  ;;  %v529_v20 = vld [vmem:[%s849_s1] sm:$0xff]  ;;  %v514_v22 = vld [vmem:[%s850_s0 + $0x4] sm:$0xf0] }
   0x7   :  { %539 = vmatpush.bf16.msra.mxu2 %v535_v5  ;;  %510 = vmatmul.msk.bf16.vlgmr.msra.gmra.mxu3 %vm182_vm0, %v452_v9  ;;  %v460_v19 = vor.u32 %v525_v17, %v457_v18  ;;  %v407_v21 = vld [vmem:[%s850_s0] sm:$0xf]  ;;  %v522_v24 = vld [vmem:[%s850_s0 + $0x44] sm:$0xf0]  ;;  %v517_v27 = vld [vmem:[%s850_s0 + $0x24] sm:$0xf] }
   0x8   :  { %v439_v23 = vld [vmem:[%s850_s0 + $0x40] sm:$0xf]  ;;  %v408_v25 = vor.u32 %v514_v22, %v407_v21  ;;  %v425_v28 = vld [vmem:[%s850_s0 + $0x28] sm:$0xf0]  ;;  %v527_v30 = vld [vmem:[%s850_s0 + $0x74] sm:$0xf] }
   0x9   :  { %v440_v26 = vor.u32 %v522_v24, %v439_v23  ;;  %v428_v29 = vor.u32 %v517_v27, %v425_v28  ;;  %v465_v31 = vld [vmem:[%s850_s0 + $0x78] sm:$0xf0]  ;;  %v415_v33 = vld [vmem:[%s850_s0 + $0x10] sm:$0xf]  ;;  %v516_v34 = vld [vmem:[%s850_s0 + $0x14] sm:$0xf0] }
   0xa   :  { %209 = vmatpush.bf16.msra.mxu0 %v534_v6  ;;  %v468_v32 = vor.u32 %v527_v30, %v465_v31  ;;  %v447_v35 = vld [vmem:[%s850_s0 + $0x50] sm:$0xf]  ;;  %v524_v36 = vld [vmem:[%s850_s0 + $0x54] sm:$0xf0]  ;;  %v416_v37 = vor.u32 %v516_v34, %v415_v33  ;;  %v519_v39 = vld [vmem:[%s850_s0 + $0x34] sm:$0xf] }
   0xb   :  { %540 = vmatpush.bf16.msra.mxu2 %v534_v6  ;;  %v448_v38 = vor.u32 %v524_v36, %v447_v35  ;;  %v433_v40 = vld [vmem:[%s850_s0 + $0x38] sm:$0xf0]  ;;  %v423_v42 = vld [vmem:[%s850_s0 + $0x20] sm:$0xf]  ;;  %v518_v43 = vld [vmem:[%s850_s0 + $0x24] sm:$0xf0] }
   0xc   :  { %v436_v41 = vor.u32 %v519_v39, %v433_v40  ;;  %v455_v44 = vld [vmem:[%s850_s0 + $0x60] sm:$0xf]  ;;  %v526_v45 = vld [vmem:[%s850_s0 + $0x64] sm:$0xf0]  ;;  %v424_v46 = vor.u32 %v518_v43, %v423_v42  ;;  %v521_v48 = vld [vmem:[%s850_s0 + $0x44] sm:$0xf] }
   0xd   :  { %v456_v47 = vor.u32 %v526_v45, %v455_v44  ;;  %v441_v49 = vld [vmem:[%s850_s0 + $0x48] sm:$0xf0]  ;;  %v431_v51 = vld [vmem:[%s850_s0 + $0x30] sm:$0xf]  ;;  %v520_v52 = vld [vmem:[%s850_s0 + $0x34] sm:$0xf0] }
   0xe   :  { %210 = vmatpush.bf16.msra.mxu0 %v533_v10  ;;  %v444_v50 = vor.u32 %v521_v48, %v441_v49  ;;  %v463_v53 = vld [vmem:[%s850_s0 + $0x70] sm:$0xf]  ;;  %v528_v54 = vld [vmem:[%s850_s0 + $0x74] sm:$0xf0]  ;;  %v432_v55 = vor.u32 %v520_v52, %v431_v51  ;;  %v707_v61 = vld [vmem:[%s851_s2] ss:$0 sm:$0xff] }
   0xf   :  { %541 = vmatpush.bf16.msra.mxu2 %v533_v10  ;;  %v464_v56 = vor.u32 %v528_v54, %v463_v53  ;;  %v337_v3 = vld [vmem:[%s852_s3] sm:$0xff]  ;;  %v338_v13 = vld [vmem:[%s852_s3 + $0x8] sm:$0xff]  ;;  %v339_v24 = vld [vmem:[%s852_s3 + $0x10] sm:$0xff] }
  0x10   :  { %v347_v36 = vld [vmem:[%s852_s3 + $0x50] sm:$0xff]  ;;  %v340_v40 = vld [vmem:[%s852_s3 + $0x18] sm:$0xff] }
  0x12   :  { %211 = vmatpush.bf16.msra.mxu0 %v532_v11 }
  0x13   :  { %542 = vmatpush.bf16.msra.mxu2 %v532_v11 }
  0x16   :  { %506 = vmatmul.msk.bf16.gmra.mxu1 %vm182_vm0, %v420_v14  ;;  %212 = vmatpush.bf16.msra.mxu0 %v531_v15 }
  0x17   :  { %543 = vmatpush.bf16.msra.mxu2 %v531_v15  ;;  %511 = vmatmul.msk.bf16.gmra.mxu3 %vm182_vm0, %v460_v19 }
  0x1a   :  { %213 = vmatpush.bf16.msra.mxu0 %v530_v16 }
  0x1b   :  { %544 = vmatpush.bf16.msra.mxu2 %v530_v16 }
  0x1e   :  { %214 = vmatpush.bf16.msra.mxu0 %v529_v20 }
  0x1f   :  { %545 = vmatpush.bf16.msra.mxu2 %v529_v20 }
  0x21   :  { %215 = vmatmul.bf16.vlgmr.msra.gmra.mxu0 %v408_v25 }
  0x22   :  { %235 = vmatmul.bf16.vlgmr.msra.gmra.mxu2 %v440_v26 }
  0x26   :  { %507 = vmatmul.msk.bf16.gmra.mxu1 %vm182_vm0, %v428_v29 }
  0x27   :  { %512 = vmatmul.msk.bf16.gmra.mxu3 %vm182_vm0, %v468_v32 }
  0x31   :  { %220 = vmatmul.bf16.gmra.mxu0 %v416_v37 }
  0x32   :  { %240 = vmatmul.bf16.gmra.mxu2 %v448_v38 }
  0x36   :  { %508 = vmatmul.msk.bf16.gmra.mxu1 %vm182_vm0, %v436_v41 }
  0x41   :  { %225 = vmatmul.bf16.gmra.mxu0 %v424_v46 }
  0x42   :  { %245 = vmatmul.bf16.gmra.mxu2 %v456_v47 }
  0x46   :  { %509 = vmatmul.msk.bf16.gmra.mxu1 %vm182_vm0, %v444_v50 }
  0x51   :  { %230 = vmatmul.bf16.gmra.mxu0 %v432_v55  ;;  %v348_v55 = vld [vmem:[%s852_s3 + $0x58] sm:$0xff] }
  0x52   :  { %250 = vmatmul.bf16.gmra.mxu2 %v464_v56 }
  0x83   :  { %v265_v57 = vpop.f32.mrf.mxu1 }
  0x8a   :  { %v290_v16 = vpop.f32.mrf.mxu3 }
  0x8b   :  { %v267_v58 = vpop.f32.mrf.mxu1 }
  0x92   :  { %v292_v31 = vpop.f32.mrf.mxu3 }
  0x93   :  { %v270_v59 = vpop.f32.mrf.mxu1 }
  0x9a   :  { %v295_v52 = vpop.f32.mrf.mxu3 }
  0x9b   :  { %v272_v60 = vpop.f32.mrf.mxu1 }
  0x9e   :  { %v216_v62 = vpop.f32.mrf.mxu0 }
  0x9f   :  { %v217_v63 = vadd.f32 %v707_v61, %v216_v62 }
  0xa1   :  { %v266_v0 = vadd.f32 %v265_v57, %v217_v63 }
  0xa3   :  { %v305_v1 = vmul.f32 0.2, %v266_v0  ;;  %v275_v2 = vpop.f32.mrf.mxu1 }
  0xa5   :  { %v321_v4 = vmax.f32 %v266_v0, %v305_v1  ;;  %v236_v5 = vpop.f32.mrf.mxu2 }
  0xa6   :  { %v218_v6 = vpop.f32.mrf.mxu0  ;;  %v237_v53 = vadd.f32 %v707_v61, %v236_v5  ;;  %v345_v5 = vld [vmem:[%s852_s3 + $0x40] sm:$0xff] }
  0xa7   :  { %v353_v7 = vadd.f32 %v337_v3, %v321_v4  ;;  %v219_v8 = vadd.f32 %v707_v61, %v218_v6 }
  0xa9   :  { %v369_v9 = vmul.f32 0.70710677, %v353_v7  ;;  %v268_v10 = vadd.f32 %v267_v58, %v219_v8 }
  0xab   :  { %385 = vst.msk [vmem:[%s853_s4] sm:$0xff] %vm182_vm0, %v369_v9  ;;  %v306_v11 = vmul.f32 0.2, %v268_v10  ;;  %v718_v12 = vpop.f32.mrf.mxu1 }
  0xad   :  { %v322_v14 = vmax.f32 %v268_v10, %v306_v11  ;;  %v723_v15 = vpop.f32.mrf.mxu2 }
  0xae   :  { %v221_v17 = vpop.f32.mrf.mxu0 }
  0xaf   :  { %v354_v18 = vadd.f32 %v338_v13, %v322_v14  ;;  %v222_v19 = vadd.f32 %v707_v61, %v221_v17  ;;  %v239_v13 = vadd.f32 %v707_v61, %v723_v15  ;;  %v349_v17 = vld [vmem:[%s852_s3 + $0x60] sm:$0xff] }
  0xb1   :  { %v370_v20 = vmul.f32 0.70710677, %v354_v18  ;;  %v271_v21 = vadd.f32 %v270_v59, %v222_v19  ;;  %v341_v59 = vld [vmem:[%s852_s3 + $0x20] sm:$0xff]  ;;  %v297_v18 = vpop.f32.mrf.mxu3 }
  0xb3   :  { %386 = vst.msk [vmem:[%s853_s4 + $0x8] sm:$0xff] %vm182_vm0, %v370_v20  ;;  %v307_v22 = vmul.f32 0.2, %v271_v21  ;;  %v730_v23 = vpop.f32.mrf.mxu1 }
  0xb5   :  { %v323_v25 = vmax.f32 %v271_v21, %v307_v22  ;;  %v241_v26 = vpop.f32.mrf.mxu2  ;;  %v342_v21 = vld [vmem:[%s852_s3 + $0x28] sm:$0xff] }
  0xb6   :  { %v242_v27 = vadd.f32 %v707_v61, %v241_v26  ;;  %v223_v28 = vpop.f32.mrf.mxu0 }
  0xb7   :  { %v355_v29 = vadd.f32 %v339_v24, %v323_v25  ;;  %v224_v30 = vadd.f32 %v707_v61, %v223_v28 }
  0xb8   :  { %v291_v32 = vadd.f32 %v290_v16, %v242_v27 }
  0xb9   :  { %v371_v33 = vmul.f32 0.70710677, %v355_v29  ;;  %v273_v34 = vadd.f32 %v272_v60, %v224_v30 }
  0xba   :  { %v315_v35 = vmul.f32 0.2, %v291_v32 }
  0xbb   :  { %387 = vst.msk [vmem:[%s853_s4 + $0x10] sm:$0xff] %vm182_vm0, %v371_v33  ;;  %v308_v37 = vmul.f32 0.2, %v273_v34  ;;  %v744_v38 = vpop.f32.mrf.mxu1 }
  0xbc   :  { %v331_v39 = vmax.f32 %v291_v32, %v315_v35 }
  0xbd   :  { %v324_v41 = vmax.f32 %v273_v34, %v308_v37  ;;  %v243_v42 = vpop.f32.mrf.mxu2 }
  0xbe   :  { %v363_v43 = vadd.f32 %v347_v36, %v331_v39  ;;  %v244_v44 = vadd.f32 %v707_v61, %v243_v42  ;;  %v226_v45 = vpop.f32.mrf.mxu0 }
  0xbf   :  { %v356_v46 = vadd.f32 %v340_v40, %v324_v41  ;;  %v227_v47 = vadd.f32 %v707_v61, %v226_v45  ;;  %v350_v41 = vld [vmem:[%s852_s3 + $0x68] sm:$0xff] }
  0xc0   :  { %v379_v48 = vmul.f32 0.70710677, %v363_v43  ;;  %v293_v49 = vadd.f32 %v292_v31, %v244_v44  ;;  %v346_v31 = vld [vmem:[%s852_s3 + $0x48] sm:$0xff] }
  0xc1   :  { %v372_v50 = vmul.f32 0.70710677, %v356_v46  ;;  %v276_v51 = vadd.f32 %v275_v2, %v227_v47  ;;  %v300_v46 = vpop.f32.mrf.mxu3 }
  0xc2   :  { %395 = vst.msk [vmem:[%s853_s4 + $0x50] sm:$0xff] %vm182_vm0, %v379_v48  ;;  %v316_v54 = vmul.f32 0.2, %v293_v49 }
  0xc3   :  { %388 = vst.msk [vmem:[%s853_s4 + $0x18] sm:$0xff] %vm182_vm0, %v372_v50  ;;  %v309_v56 = vmul.f32 0.2, %v276_v51  ;;  %v285_v57 = vpop.f32.mrf.mxu1 }
  0xc4   :  { %v332_v58 = vmax.f32 %v293_v49, %v316_v54  ;;  %v286_v60 = vadd.f32 %v285_v57, %v237_v53 }
  0xc5   :  { %v325_v62 = vmax.f32 %v276_v51, %v309_v56  ;;  %v246_v63 = vpop.f32.mrf.mxu2 }
  0xc6   :  { %v364_v0 = vadd.f32 %v348_v55, %v332_v58  ;;  %v313_v1 = vmul.f32 0.2, %v286_v60  ;;  %v247_v2 = vadd.f32 %v707_v61, %v246_v63  ;;  %v228_v3 = vpop.f32.mrf.mxu0  ;;  %v351_v58 = vld [vmem:[%s852_s3 + $0x70] sm:$0xff] }
  0xc7   :  { %v357_v4 = vadd.f32 %v341_v59, %v325_v62  ;;  %v229_v6 = vadd.f32 %v707_v61, %v228_v3 }
  0xc8   :  { %v380_v7 = vmul.f32 0.70710677, %v364_v0  ;;  %v329_v8 = vmax.f32 %v286_v60, %v313_v1  ;;  %v296_v9 = vadd.f32 %v295_v52, %v247_v2 }
  0xc9   :  { %v373_v10 = vmul.f32 0.70710677, %v357_v4  ;;  %v278_v11 = vadd.f32 %v718_v12, %v229_v6  ;;  %v302_v3 = vpop.f32.mrf.mxu3 }
  0xca   :  { %396 = vst.msk [vmem:[%s853_s4 + $0x58] sm:$0xff] %vm182_vm0, %v380_v7  ;;  %v361_v14 = vadd.f32 %v345_v5, %v329_v8  ;;  %v317_v16 = vmul.f32 0.2, %v296_v9 }
  0xcb   :  { %389 = vst.msk [vmem:[%s853_s4 + $0x20] sm:$0xff] %vm182_vm0, %v373_v10  ;;  %v310_v12 = vmul.f32 0.2, %v278_v11  ;;  %v287_v19 = vpop.f32.mrf.mxu1 }
  0xcc   :  { %v377_v15 = vmul.f32 0.70710677, %v361_v14  ;;  %v333_v20 = vmax.f32 %v296_v9, %v317_v16  ;;  %v288_v22 = vadd.f32 %v287_v19, %v239_v13 }
  0xcd   :  { %v326_v24 = vmax.f32 %v278_v11, %v310_v12  ;;  %v248_v25 = vpop.f32.mrf.mxu2 }
  0xce   :  { %393 = vst.msk [vmem:[%s853_s4 + $0x40] sm:$0xff] %vm182_vm0, %v377_v15  ;;  %v365_v26 = vadd.f32 %v349_v17, %v333_v20  ;;  %v314_v27 = vmul.f32 0.2, %v288_v22  ;;  %v249_v28 = vadd.f32 %v707_v61, %v248_v25  ;;  %v231_v29 = vpop.f32.mrf.mxu0 }
  0xcf   :  { %v358_v30 = vadd.f32 %v342_v21, %v326_v24  ;;  %v232_v32 = vadd.f32 %v707_v61, %v231_v29 }
  0xd0   :  { %v381_v33 = vmul.f32 0.70710677, %v365_v26  ;;  %v330_v34 = vmax.f32 %v288_v22, %v314_v27  ;;  %v298_v35 = vadd.f32 %v297_v18, %v249_v28 }
  0xd1   :  { %v374_v36 = vmul.f32 0.70710677, %v358_v30  ;;  %v281_v37 = vadd.f32 %v730_v23, %v232_v32  ;;  %v343_v23 = vld [vmem:[%s852_s3 + $0x30] sm:$0xff] }
  0xd2   :  { %397 = vst.msk [vmem:[%s853_s4 + $0x60] sm:$0xff] %vm182_vm0, %v381_v33  ;;  %v362_v39 = vadd.f32 %v346_v31, %v330_v34  ;;  %v318_v40 = vmul.f32 0.2, %v298_v35 }
  0xd3   :  { %390 = vst.msk [vmem:[%s853_s4 + $0x28] sm:$0xff] %vm182_vm0, %v374_v36  ;;  %v311_v42 = vmul.f32 0.2, %v281_v37 }
  0xd4   :  { %v378_v43 = vmul.f32 0.70710677, %v362_v39  ;;  %v334_v44 = vmax.f32 %v298_v35, %v318_v40 }
  0xd5   :  { %v327_v45 = vmax.f32 %v281_v37, %v311_v42  ;;  %v251_v47 = vpop.f32.mrf.mxu2 }
  0xd6   :  { %394 = vst.msk [vmem:[%s853_s4 + $0x48] sm:$0xff] %vm182_vm0, %v378_v43  ;;  %v366_v48 = vadd.f32 %v350_v41, %v334_v44  ;;  %v252_v49 = vadd.f32 %v707_v61, %v251_v47  ;;  %v233_v50 = vpop.f32.mrf.mxu0 }
  0xd7   :  { %v359_v51 = vadd.f32 %v343_v23, %v327_v45  ;;  %v234_v52 = vadd.f32 %v707_v61, %v233_v50 }
  0xd8   :  { %v382_v53 = vmul.f32 0.70710677, %v366_v48  ;;  %v301_v54 = vadd.f32 %v300_v46, %v252_v49 }
  0xd9   :  { %v375_v55 = vmul.f32 0.70710677, %v359_v51  ;;  %v283_v56 = vadd.f32 %v744_v38, %v234_v52  ;;  %v344_v38 = vld [vmem:[%s852_s3 + $0x38] sm:$0xff] }
  0xda   :  { %398 = vst.msk [vmem:[%s853_s4 + $0x68] sm:$0xff] %vm182_vm0, %v382_v53  ;;  %v319_v57 = vmul.f32 0.2, %v301_v54 }
  0xdb   :  { %391 = vst.msk [vmem:[%s853_s4 + $0x30] sm:$0xff] %vm182_vm0, %v375_v55  ;;  %v312_v59 = vmul.f32 0.2, %v283_v56 }
  0xdc   :  { %v335_v60 = vmax.f32 %v301_v54, %v319_v57 }
  0xdd   :  { %v328_v62 = vmax.f32 %v283_v56, %v312_v59  ;;  %v253_v63 = vpop.f32.mrf.mxu2 }
  0xde   :  { %v367_v0 = vadd.f32 %v351_v58, %v335_v60  ;;  %v254_v1 = vadd.f32 %v707_v61, %v253_v63  ;;  %v352_v61 = vld [vmem:[%s852_s3 + $0x78] sm:$0xff] }
  0xdf   :  { %v360_v2 = vadd.f32 %v344_v38, %v328_v62 }
  0xe0   :  { %v383_v4 = vmul.f32 0.70710677, %v367_v0  ;;  %v303_v5 = vadd.f32 %v302_v3, %v254_v1 }
  0xe1   :  { %v376_v6 = vmul.f32 0.70710677, %v360_v2 }
  0xe2   :  { %399 = vst.msk [vmem:[%s853_s4 + $0x70] sm:$0xff] %vm182_vm0, %v383_v4  ;;  %v320_v7 = vmul.f32 0.2, %v303_v5 }
  0xe3   :  { %392 = vst.msk [vmem:[%s853_s4 + $0x38] sm:$0xff] %vm182_vm0, %v376_v6 }
  0xe4   :  { %v336_v8 = vmax.f32 %v303_v5, %v320_v7 }
  0xe6   :  { %v368_v9 = vadd.f32 %v352_v61, %v336_v8 }
  0xe8   :  { %v384_v10 = vmul.f32 0.70710677, %v368_v9 }
  0xea   :  { %400 = vst.msk [vmem:[%s853_s4 + $0x78] sm:$0xff] %vm182_vm0, %v384_v10 }

// kernel: content_encoder_forward.11
= control target key start
LH: loop header
LB: loop body
LE: loop exit
PB: predicated region body
PF: predicated region fallthrough
CT: control target
= control target key end

     0   :  { %vm183_vm0 = vcmask 130048   ;;  %s851_s0 = inlined_call_operand.vmem [shape: bf16[128,144], index: 0, kind: input, shape index: {}]   ;;  %s852_s1 = inlined_call_operand.vmem [shape: bf16[144,16], index: 1, kind: input, shape index: {}]   ;;  %s853_s2 = inlined_call_operand.vmem [shape: f32[1,16], index: 2, kind: input, shape index: {}]   ;;  %s854_s3 = inlined_call_operand.vmem [shape: f32[128,16], index: 3, kind: input, shape index: {}]   ;;  %s855_s4 = inlined_call_operand.hbm [shape: f32[128,16], index: 4, kind: output, shape index: {}]  }
   0x1   :  { %v551_v0 = vld [vmem:[%s852_s1 + $0x38] sm:$0xff]  ;;  %v552_v1 = vld [vmem:[%s852_s1 + $0x40] sm:$0xff]  ;;  %v424_v3 = vld [vmem:[%s851_s0 + $0x8] sm:$0xf0] }
   0x2   :  { %v528_v2 = vld [vmem:[%s851_s0 + $0x4] sm:$0xf]  ;;  %208 = vmatpush.bf16.msra.mxu0 %v551_v0  ;;  %553 = vmatpush.bf16.msra.mxu2 %v551_v0  ;;  %v550_v5 = vld [vmem:[%s852_s1 + $0x30] sm:$0xff]  ;;  %v549_v6 = vld [vmem:[%s852_s1 + $0x28] sm:$0xff] }
   0x3   :  { %v427_v4 = vor.u32 %v528_v2, %v424_v3  ;;  %264 = vmatpush.bf16.msra.mxu1 %v552_v1  ;;  %561 = vmatpush.bf16.msra.mxu3 %v552_v1  ;;  %v538_v7 = vld [vmem:[%s851_s0 + $0x54] sm:$0xf]  ;;  %v464_v8 = vld [vmem:[%s851_s0 + $0x58] sm:$0xf0] }
   0x4   :  { %v467_v9 = vor.u32 %v538_v7, %v464_v8 }
   0x6   :  { %520 = vmatmul.msk.bf16.vlgmr.msra.gmra.mxu1 %vm183_vm0, %v427_v4  ;;  %209 = vmatpush.bf16.msra.mxu0 %v550_v5 }
   0x7   :  { %554 = vmatpush.bf16.msra.mxu2 %v550_v5 }
   0x8   :  { %9 = vsyncpa [#allocation3], 0  ;;  %525 = vmatmul.msk.bf16.vlgmr.msra.gmra.mxu3 %vm183_vm0, %v467_v9  ;;  %v548_v10 = vld [vmem:[%s852_s1 + $0x20] sm:$0xff]  ;;  %v547_v11 = vld [vmem:[%s852_s1 + $0x18] sm:$0xff]  ;;  %s592_s20 = smov [#allocation2]   ;;  %s408_s24 = sshll.u32 %s855_s4, 4  ;;  %s409_s24 = int_to_ptr.hbm [resolvable:$true] %s408_s24 }
   0x9   :  { %v530_v12 = vld [vmem:[%s851_s0 + $0x14] sm:$0xf]  ;;  %v432_v13 = vld [vmem:[%s851_s0 + $0x18] sm:$0xf0]  ;;  %v545_v16 = vld [vmem:[%s852_s1 + $0x8] sm:$0xff]  ;;  %s406_s21 = sshll.u32 %s592_s20, 4  ;;  %s407_s21 = int_to_ptr.vmem [resolvable:$true] %s406_s21 }
   0xa   :  { %210 = vmatpush.bf16.msra.mxu0 %v549_v6  ;;  %v435_v14 = vor.u32 %v530_v12, %v432_v13  ;;  %v546_v15 = vld [vmem:[%s852_s1 + $0x10] sm:$0xff]  ;;  %v540_v17 = vld [vmem:[%s851_s0 + $0x64] sm:$0xf]  ;;  %v472_v18 = vld [vmem:[%s851_s0 + $0x68] sm:$0xf0]  ;;  %s593_s25 = smov 128  }
   0xb   :  { %555 = vmatpush.bf16.msra.mxu2 %v549_v6  ;;  %v475_v19 = vor.u32 %v540_v17, %v472_v18  ;;  %v544_v20 = vld [vmem:[%s852_s1] sm:$0xff]  ;;  %v529_v22 = vld [vmem:[%s851_s0 + $0x4] sm:$0xf0]  ;;  %v440_v28 = vld [vmem:[%s851_s0 + $0x28] sm:$0xf0]  ;;  %s594_s26 = smov 8  }
   0xc   :  { %v422_v21 = vld [vmem:[%s851_s0] sm:$0xf]  ;;  %v537_v24 = vld [vmem:[%s851_s0 + $0x44] sm:$0xf0]  ;;  %v532_v27 = vld [vmem:[%s851_s0 + $0x24] sm:$0xf] }
   0xd   :  { %v454_v23 = vld [vmem:[%s851_s0 + $0x40] sm:$0xf]  ;;  %v423_v25 = vor.u32 %v529_v22, %v422_v21  ;;  %v443_v29 = vor.u32 %v532_v27, %v440_v28  ;;  %v542_v30 = vld [vmem:[%s851_s0 + $0x74] sm:$0xf]  ;;  %v480_v31 = vld [vmem:[%s851_s0 + $0x78] sm:$0xf0] }
   0xe   :  { %211 = vmatpush.bf16.msra.mxu0 %v548_v10  ;;  %v455_v26 = vor.u32 %v537_v24, %v454_v23  ;;  %v483_v32 = vor.u32 %v542_v30, %v480_v31  ;;  %v430_v33 = vld [vmem:[%s851_s0 + $0x10] sm:$0xf]  ;;  %v531_v34 = vld [vmem:[%s851_s0 + $0x14] sm:$0xf0]  ;;  %v534_v39 = vld [vmem:[%s851_s0 + $0x34] sm:$0xf] }
   0xf   :  { %556 = vmatpush.bf16.msra.mxu2 %v548_v10  ;;  %v462_v35 = vld [vmem:[%s851_s0 + $0x50] sm:$0xf]  ;;  %v539_v36 = vld [vmem:[%s851_s0 + $0x54] sm:$0xf0]  ;;  %v431_v37 = vor.u32 %v531_v34, %v430_v33  ;;  %v448_v40 = vld [vmem:[%s851_s0 + $0x38] sm:$0xf0] }
  0x10   :  { %v463_v38 = vor.u32 %v539_v36, %v462_v35  ;;  %v451_v41 = vor.u32 %v534_v39, %v448_v40  ;;  %v438_v42 = vld [vmem:[%s851_s0 + $0x20] sm:$0xf]  ;;  %v533_v43 = vld [vmem:[%s851_s0 + $0x24] sm:$0xf0]  ;;  %v536_v48 = vld [vmem:[%s851_s0 + $0x44] sm:$0xf] }
  0x11   :  { %v470_v44 = vld [vmem:[%s851_s0 + $0x60] sm:$0xf]  ;;  %v541_v45 = vld [vmem:[%s851_s0 + $0x64] sm:$0xf0]  ;;  %v439_v46 = vor.u32 %v533_v43, %v438_v42  ;;  %v456_v49 = vld [vmem:[%s851_s0 + $0x48] sm:$0xf0] }
  0x12   :  { %212 = vmatpush.bf16.msra.mxu0 %v547_v11  ;;  %v471_v47 = vor.u32 %v541_v45, %v470_v44  ;;  %v459_v50 = vor.u32 %v536_v48, %v456_v49  ;;  %v446_v51 = vld [vmem:[%s851_s0 + $0x30] sm:$0xf]  ;;  %v535_v52 = vld [vmem:[%s851_s0 + $0x34] sm:$0xf0]  ;;  %v754_v61 = vld [vmem:[%s853_s2] ss:$0 sm:$0xff] }
  0x13   :  { %557 = vmatpush.bf16.msra.mxu2 %v547_v11  ;;  %v478_v53 = vld [vmem:[%s851_s0 + $0x70] sm:$0xf]  ;;  %v543_v54 = vld [vmem:[%s851_s0 + $0x74] sm:$0xf0]  ;;  %v447_v55 = vor.u32 %v535_v52, %v446_v51  ;;  %v338_v3 = vld [vmem:[%s854_s3] sm:$0xff] }
  0x14   :  { %v479_v56 = vor.u32 %v543_v54, %v478_v53  ;;  %v339_v13 = vld [vmem:[%s854_s3 + $0x8] sm:$0xff]  ;;  %v340_v24 = vld [vmem:[%s854_s3 + $0x10] sm:$0xff]  ;;  %v341_v40 = vld [vmem:[%s854_s3 + $0x18] sm:$0xff] }
  0x15   :  { %v348_v36 = vld [vmem:[%s854_s3 + $0x50] sm:$0xff] }
  0x16   :  { %521 = vmatmul.msk.bf16.gmra.mxu1 %vm183_vm0, %v435_v14  ;;  %213 = vmatpush.bf16.msra.mxu0 %v546_v15 }
  0x17   :  { %558 = vmatpush.bf16.msra.mxu2 %v546_v15 }
  0x18   :  { %526 = vmatmul.msk.bf16.gmra.mxu3 %vm183_vm0, %v475_v19 }
  0x1a   :  { %214 = vmatpush.bf16.msra.mxu0 %v545_v16 }
  0x1b   :  { %559 = vmatpush.bf16.msra.mxu2 %v545_v16 }
  0x1e   :  { %215 = vmatpush.bf16.msra.mxu0 %v544_v20 }
  0x1f   :  { %560 = vmatpush.bf16.msra.mxu2 %v544_v20 }
  0x21   :  { %216 = vmatmul.bf16.vlgmr.msra.gmra.mxu0 %v423_v25 }
  0x22   :  { %236 = vmatmul.bf16.vlgmr.msra.gmra.mxu2 %v455_v26 }
  0x26   :  { %522 = vmatmul.msk.bf16.gmra.mxu1 %vm183_vm0, %v443_v29 }
  0x28   :  { %527 = vmatmul.msk.bf16.gmra.mxu3 %vm183_vm0, %v483_v32 }
  0x31   :  { %221 = vmatmul.bf16.gmra.mxu0 %v431_v37 }
  0x32   :  { %241 = vmatmul.bf16.gmra.mxu2 %v463_v38 }
  0x36   :  { %523 = vmatmul.msk.bf16.gmra.mxu1 %vm183_vm0, %v451_v41 }
  0x41   :  { %226 = vmatmul.bf16.gmra.mxu0 %v439_v46 }
  0x42   :  { %246 = vmatmul.bf16.gmra.mxu2 %v471_v47 }
  0x46   :  { %524 = vmatmul.msk.bf16.gmra.mxu1 %vm183_vm0, %v459_v50 }
  0x51   :  { %231 = vmatmul.bf16.gmra.mxu0 %v447_v55  ;;  %v349_v55 = vld [vmem:[%s854_s3 + $0x58] sm:$0xff] }
  0x52   :  { %251 = vmatmul.bf16.gmra.mxu2 %v479_v56 }
  0x83   :  { %v266_v57 = vpop.f32.mrf.mxu1 }
  0x8b   :  { %v268_v58 = vpop.f32.mrf.mxu1  ;;  %v291_v16 = vpop.f32.mrf.mxu3 }
  0x93   :  { %v271_v59 = vpop.f32.mrf.mxu1  ;;  %v293_v31 = vpop.f32.mrf.mxu3 }
  0x9b   :  { %v273_v60 = vpop.f32.mrf.mxu1  ;;  %v296_v52 = vpop.f32.mrf.mxu3 }
  0x9e   :  { %v217_v62 = vpop.f32.mrf.mxu0 }
  0x9f   :  { %v218_v63 = vadd.f32 %v754_v61, %v217_v62 }
  0xa1   :  { %v267_v0 = vadd.f32 %v266_v57, %v218_v63 }
  0xa3   :  { %v306_v1 = vmul.f32 0.2, %v267_v0  ;;  %v276_v2 = vpop.f32.mrf.mxu1 }
  0xa5   :  { %v322_v4 = vmax.f32 %v267_v0, %v306_v1  ;;  %v237_v5 = vpop.f32.mrf.mxu2 }
  0xa6   :  { %v219_v6 = vpop.f32.mrf.mxu0  ;;  %v238_v53 = vadd.f32 %v754_v61, %v237_v5  ;;  %v346_v5 = vld [vmem:[%s854_s3 + $0x40] sm:$0xff] }
  0xa7   :  { %v354_v7 = vadd.f32 %v338_v3, %v322_v4  ;;  %v220_v8 = vadd.f32 %v754_v61, %v219_v6 }
  0xa9   :  { %v370_v9 = vmul.f32 0.70710677, %v354_v7  ;;  %v269_v10 = vadd.f32 %v268_v58, %v220_v8 }
  0xab   :  { %386 = vst.msk [vmem:[#allocation2] sm:$0xff] %vm183_vm0, %v370_v9  ;;  %v307_v11 = vmul.f32 0.2, %v269_v10  ;;  %v762_v12 = vpop.f32.mrf.mxu1 }
  0xad   :  { %v323_v14 = vmax.f32 %v269_v10, %v307_v11  ;;  %v767_v15 = vpop.f32.mrf.mxu2 }
  0xae   :  { %v222_v17 = vpop.f32.mrf.mxu0 }
  0xaf   :  { %v355_v18 = vadd.f32 %v339_v13, %v323_v14  ;;  %v223_v19 = vadd.f32 %v754_v61, %v222_v17  ;;  %v240_v13 = vadd.f32 %v754_v61, %v767_v15  ;;  %v350_v17 = vld [vmem:[%s854_s3 + $0x60] sm:$0xff] }
  0xb1   :  { %v371_v20 = vmul.f32 0.70710677, %v355_v18  ;;  %v272_v21 = vadd.f32 %v271_v59, %v223_v19  ;;  %v342_v59 = vld [vmem:[%s854_s3 + $0x20] sm:$0xff]  ;;  %v298_v19 = vpop.f32.mrf.mxu3 }
  0xb3   :  { %387 = vst.msk [vmem:[#allocation2 + $0x8] sm:$0xff] %vm183_vm0, %v371_v20  ;;  %v308_v22 = vmul.f32 0.2, %v272_v21  ;;  %v771_v23 = vpop.f32.mrf.mxu1 }
  0xb5   :  { %v324_v25 = vmax.f32 %v272_v21, %v308_v22  ;;  %v242_v26 = vpop.f32.mrf.mxu2 }
  0xb6   :  { %v243_v27 = vadd.f32 %v754_v61, %v242_v26  ;;  %v224_v28 = vpop.f32.mrf.mxu0 }
  0xb7   :  { %v356_v29 = vadd.f32 %v340_v24, %v324_v25  ;;  %v225_v30 = vadd.f32 %v754_v61, %v224_v28 }
  0xb8   :  { %v292_v32 = vadd.f32 %v291_v16, %v243_v27 }
  0xb9   :  { %v372_v33 = vmul.f32 0.70710677, %v356_v29  ;;  %v274_v34 = vadd.f32 %v273_v60, %v225_v30 }
  0xba   :  { %v316_v35 = vmul.f32 0.2, %v292_v32 }
  0xbb   :  { %388 = vst.msk [vmem:[#allocation2 + $0x10] sm:$0xff] %vm183_vm0, %v372_v33  ;;  %v309_v37 = vmul.f32 0.2, %v274_v34  ;;  %v782_v38 = vpop.f32.mrf.mxu1 }
  0xbc   :  { %v332_v39 = vmax.f32 %v292_v32, %v316_v35 }
  0xbd   :  { %v325_v41 = vmax.f32 %v274_v34, %v309_v37  ;;  %v244_v42 = vpop.f32.mrf.mxu2 }
  0xbe   :  { %v364_v43 = vadd.f32 %v348_v36, %v332_v39  ;;  %v245_v44 = vadd.f32 %v754_v61, %v244_v42  ;;  %v227_v45 = vpop.f32.mrf.mxu0 }
  0xbf   :  { %v357_v46 = vadd.f32 %v341_v40, %v325_v41  ;;  %v228_v47 = vadd.f32 %v754_v61, %v227_v45  ;;  %v351_v41 = vld [vmem:[%s854_s3 + $0x68] sm:$0xff]  ;;  %v344_v45 = vld [vmem:[%s854_s3 + $0x30] sm:$0xff] }
  0xc0   :  { %v380_v48 = vmul.f32 0.70710677, %v364_v43  ;;  %v294_v49 = vadd.f32 %v293_v31, %v245_v44  ;;  %v347_v31 = vld [vmem:[%s854_s3 + $0x48] sm:$0xff] }
  0xc1   :  { %v373_v50 = vmul.f32 0.70710677, %v357_v46  ;;  %v277_v51 = vadd.f32 %v276_v2, %v228_v47  ;;  %v301_v47 = vpop.f32.mrf.mxu3 }
  0xc2   :  { %396 = vst.msk [vmem:[#allocation2 + $0x50] sm:$0xff] %vm183_vm0, %v380_v48  ;;  %v317_v54 = vmul.f32 0.2, %v294_v49 }
  0xc3   :  { %389 = vst.msk [vmem:[#allocation2 + $0x18] sm:$0xff] %vm183_vm0, %v373_v50  ;;  %v310_v56 = vmul.f32 0.2, %v277_v51  ;;  %v286_v57 = vpop.f32.mrf.mxu1 }
  0xc4   :  { %v333_v58 = vmax.f32 %v294_v49, %v317_v54  ;;  %v287_v60 = vadd.f32 %v286_v57, %v238_v53 }
  0xc5   :  { %v326_v62 = vmax.f32 %v277_v51, %v310_v56  ;;  %v247_v63 = vpop.f32.mrf.mxu2 }
  0xc6   :  { %v365_v0 = vadd.f32 %v349_v55, %v333_v58  ;;  %v314_v1 = vmul.f32 0.2, %v287_v60  ;;  %v248_v2 = vadd.f32 %v754_v61, %v247_v63  ;;  %v229_v3 = vpop.f32.mrf.mxu0  ;;  %v352_v58 = vld [vmem:[%s854_s3 + $0x70] sm:$0xff] }
  0xc7   :  { %v358_v4 = vadd.f32 %v342_v59, %v326_v62  ;;  %v230_v6 = vadd.f32 %v754_v61, %v229_v3  ;;  %v345_v62 = vld [vmem:[%s854_s3 + $0x38] sm:$0xff] }
  0xc8   :  { %v381_v7 = vmul.f32 0.70710677, %v365_v0  ;;  %v330_v8 = vmax.f32 %v287_v60, %v314_v1  ;;  %v297_v9 = vadd.f32 %v296_v52, %v248_v2 }
  0xc9   :  { %v374_v10 = vmul.f32 0.70710677, %v358_v4  ;;  %v279_v11 = vadd.f32 %v762_v12, %v230_v6  ;;  %v343_v12 = vld [vmem:[%s854_s3 + $0x28] sm:$0xff]  ;;  %v303_v3 = vpop.f32.mrf.mxu3 }
  0xca   :  { %397 = vst.msk [vmem:[#allocation2 + $0x58] sm:$0xff] %vm183_vm0, %v381_v7  ;;  %v362_v14 = vadd.f32 %v346_v5, %v330_v8  ;;  %v318_v16 = vmul.f32 0.2, %v297_v9  ;;  %v353_v8 = vld [vmem:[%s854_s3 + $0x78] sm:$0xff] }
  0xcb   :  { %390 = vst.msk [vmem:[#allocation2 + $0x20] sm:$0xff] %vm183_vm0, %v374_v10  ;;  %v311_v18 = vmul.f32 0.2, %v279_v11  ;;  %v288_v20 = vpop.f32.mrf.mxu1 }
  0xcc   :  { %v378_v21 = vmul.f32 0.70710677, %v362_v14  ;;  %v334_v22 = vmax.f32 %v297_v9, %v318_v16  ;;  %v289_v15 = vadd.f32 %v288_v20, %v240_v13 }
  0xcd   :  { %v327_v24 = vmax.f32 %v279_v11, %v311_v18  ;;  %v249_v25 = vpop.f32.mrf.mxu2 }
  0xce   :  { %394 = vst.msk [vmem:[#allocation2 + $0x40] sm:$0xff] %vm183_vm0, %v378_v21  ;;  %v366_v26 = vadd.f32 %v350_v17, %v334_v22  ;;  %v315_v27 = vmul.f32 0.2, %v289_v15  ;;  %v250_v28 = vadd.f32 %v754_v61, %v249_v25  ;;  %v232_v29 = vpop.f32.mrf.mxu0 }
  0xcf   :  { %v359_v30 = vadd.f32 %v343_v12, %v327_v24  ;;  %v233_v32 = vadd.f32 %v754_v61, %v232_v29 }
  0xd0   :  { %v382_v33 = vmul.f32 0.70710677, %v366_v26  ;;  %v331_v34 = vmax.f32 %v289_v15, %v315_v27  ;;  %v299_v35 = vadd.f32 %v298_v19, %v250_v28 }
  0xd1   :  { %v375_v36 = vmul.f32 0.70710677, %v359_v30  ;;  %v282_v37 = vadd.f32 %v771_v23, %v233_v32 }
  0xd2   :  { %398 = vst.msk [vmem:[#allocation2 + $0x60] sm:$0xff] %vm183_vm0, %v382_v33  ;;  %v363_v39 = vadd.f32 %v347_v31, %v331_v34  ;;  %v319_v40 = vmul.f32 0.2, %v299_v35 }
  0xd3   :  { %391 = vst.msk [vmem:[#allocation2 + $0x28] sm:$0xff] %vm183_vm0, %v375_v36  ;;  %v312_v42 = vmul.f32 0.2, %v282_v37 }
  0xd4   :  { %v379_v43 = vmul.f32 0.70710677, %v363_v39  ;;  %v335_v44 = vmax.f32 %v299_v35, %v319_v40 }
  0xd5   :  { %v328_v46 = vmax.f32 %v282_v37, %v312_v42  ;;  %v252_v23 = vpop.f32.mrf.mxu2 }
  0xd6   :  { %395 = vst.msk [vmem:[#allocation2 + $0x48] sm:$0xff] %vm183_vm0, %v379_v43  ;;  %v367_v48 = vadd.f32 %v351_v41, %v335_v44  ;;  %v253_v49 = vadd.f32 %v754_v61, %v252_v23  ;;  %v234_v50 = vpop.f32.mrf.mxu0 }
  0xd7   :  { %v360_v51 = vadd.f32 %v344_v45, %v328_v46  ;;  %v235_v52 = vadd.f32 %v754_v61, %v234_v50 }
  0xd8   :  { %v383_v53 = vmul.f32 0.70710677, %v367_v48  ;;  %v302_v54 = vadd.f32 %v301_v47, %v253_v49 }
  0xd9   :  { %v376_v55 = vmul.f32 0.70710677, %v360_v51  ;;  %v284_v56 = vadd.f32 %v782_v38, %v235_v52 }
  0xda   :  { %399 = vst.msk [vmem:[#allocation2 + $0x68] sm:$0xff] %vm183_vm0, %v383_v53  ;;  %v320_v57 = vmul.f32 0.2, %v302_v54 }
  0xdb   :  { %392 = vst.msk [vmem:[#allocation2 + $0x30] sm:$0xff] %vm183_vm0, %v376_v55  ;;  %v313_v59 = vmul.f32 0.2, %v284_v56 }
  0xdc   :  { %v336_v60 = vmax.f32 %v302_v54, %v320_v57 }
  0xdd   :  { %v329_v63 = vmax.f32 %v284_v56, %v313_v59  ;;  %v254_v0 = vpop.f32.mrf.mxu2 }
  0xde   :  { %v368_v1 = vadd.f32 %v352_v58, %v336_v60  ;;  %v255_v38 = vadd.f32 %v754_v61, %v254_v0 }
  0xdf   :  { %v361_v2 = vadd.f32 %v345_v62, %v329_v63 }
  0xe0   :  { %v384_v4 = vmul.f32 0.70710677, %v368_v1  ;;  %v304_v5 = vadd.f32 %v303_v3, %v255_v38 }
  0xe1   :  { %v377_v6 = vmul.f32 0.70710677, %v361_v2 }
  0xe2   :  { %400 = vst.msk [vmem:[#allocation2 + $0x70] sm:$0xff] %vm183_vm0, %v384_v4  ;;  %v321_v7 = vmul.f32 0.2, %v304_v5 }
  0xe3   :  { %393 = vst.msk [vmem:[#allocation2 + $0x38] sm:$0xff] %vm183_vm0, %v377_v6 }
  0xe4   :  { %v337_v9 = vmax.f32 %v304_v5, %v321_v7 }
  0xe6   :  { %v369_v61 = vadd.f32 %v353_v8, %v337_v9 }
  0xe8   :  { %v385_v10 = vmul.f32 0.70710677, %v369_v61 }
  0xea   :  { %401 = vst.msk [vmem:[#allocation2 + $0x78] sm:$0xff] %vm183_vm0, %v385_v10 }
  0xeb   :  { %414 = dma.vmem_to_hbm [thread:$0]  %s407_s21, 2048, %s409_s24, [#allocation3], %s593_s25, %s593_s25, %s594_s26  }
  0xec   :  { %590 = dma.done.wait [#allocation3], 2048  }
  0xed   :  { %591 = vsyncadd [#allocation3], 4294965248 }
  0xee   :  { %419 = vsyncpa [#allocation3], 1 }

</bundles_post_ra>
